<compile_context>
chip_gen: v7x
topology: tpu7x:2x2x1
jax: 0.10.0
libtpu: 0.0.40
codegen_flags: <defaults>
</compile_context>

<pallas_src>
import math
import string

import jax
import jax.numpy as jnp
from jax.experimental import pallas as pl
from jax.experimental.pallas import tpu as pltpu

FLAG_CHARS = string.ascii_letters + string.digits + '{}-'
CHARS = '^$' + FLAG_CHARS
FLAG_LEN = 43
SEQ = FLAG_LEN + 2          # 45
D = 256
VOCAB = len(CHARS)          # 67


# ----------------------------------------------------------------------------
# Pallas kernel: fused MLPs + attention + max-pool + head, single VMEM-resident
# program (no grid; ~1 MiB of bf16 weights + small activations).
# ----------------------------------------------------------------------------
def transformer_kernel(h_ref, w1_ref, b1_ref, w2_ref, b2_ref, wff_ref, bff_ref,
                       out_ref):
    # --- fused first layer of the k/q/v MLPs: one (SEQ,D)@(D,3D) MXU matmul ---
    h = h_ref[...]                                                    # (SEQ, D) bf16
    z = jnp.dot(h, w1_ref[...], preferred_element_type=jnp.float32)   # (SEQ, 3D) f32
    z = jnp.maximum(z + b1_ref[...], 0.0)                             # bias + ReLU in f32
    zb = z.astype(jnp.bfloat16)

    # --- second layers: stacked weights, lane-aligned static slices of z ------
    def second_layer(i):
        zi = zb[:, i * D:(i + 1) * D]                                  # (SEQ, D) bf16
        acc = jnp.dot(zi, w2_ref[i], preferred_element_type=jnp.float32)
        return acc + b2_ref[:, i * D:(i + 1) * D]                      # f32

    k = second_layer(0)
    q = second_layer(1)     # attention scale=100 pre-folded into w2[1] / b2 q-slice
    v = second_layer(2)

    # --- attention: softmax(q k^T) v  (scale already folded into q) ----------
    s = jax.lax.dot_general(q.astype(jnp.bfloat16), k.astype(jnp.bfloat16),
                            (((1,), (1,)), ((), ())),
                            preferred_element_type=jnp.float32)        # (SEQ, SEQ)
    s_max = jnp.max(s, axis=-1, keepdims=True)
    p = jnp.exp(s - s_max)
    attn = p / jnp.sum(p, axis=-1, keepdims=True)                      # f32 softmax
    y = jnp.dot(attn.astype(jnp.bfloat16), v.astype(jnp.bfloat16),
                preferred_element_type=jnp.float32)                    # (SEQ, D)

    # --- max over sequence dim (torch: y.max(1).values) ----------------------
    y_max = jnp.max(y, axis=0, keepdims=True)                          # (1, D)

    # --- head: 1-wide output -> VPU multiply + cross-lane sum (no MXU) -------
    logit = jnp.sum(y_max * wff_ref[...], axis=-1, keepdims=True) + bff_ref[0, 0]
    out_ref[...] = jax.nn.sigmoid(logit)                               # (1, 1)


# ----------------------------------------------------------------------------
# Glue: parameter init, packing (concat / bf16 cast / scale fold), pallas_call.
# ----------------------------------------------------------------------------
def make_positional_encoding(d_model: int, max_len: int) -> jnp.ndarray:
    position = jnp.arange(max_len, dtype=jnp.float32)[:, None]          # (L, 1)
    div_term = jnp.exp(jnp.arange(0, d_model, 2, dtype=jnp.float32)
                       * (-math.log(10000.0) / d_model))                # (D/2,)
    pe = jnp.zeros((max_len, d_model), dtype=jnp.float32)
    pe = pe.at[:, 0::2].set(jnp.sin(position * div_term))
    pe = pe.at[:, 1::2].set(jnp.cos(position * div_term))
    return pe                                                           # (L, D)


def init_params(key):
    """Deterministic synthetic parameters matching the torch module's shapes.
    Linear weights are stored pre-transposed as (in, out)."""
    ks = jax.random.split(key, 16)
    scale = 0.02

    def lin(kw, in_dim, out_dim):
        w = scale * jax.random.normal(kw, (in_dim, out_dim), jnp.float32)
        b = jnp.zeros((1, out_dim), jnp.float32)
        return w, b

    params = {}
    params['emb'] = scale * jax.random.normal(ks[0], (VOCAB, D), jnp.float32)
    params['wk1'], params['bk1'] = lin(ks[1], D, D)
    params['wk2'], params['bk2'] = lin(ks[2], D, D)
    params['wq1'], params['bq1'] = lin(ks[3], D, D)
    params['wq2'], params['bq2'] = lin(ks[4], D, D)
    params['wv1'], params['bv1'] = lin(ks[5], D, D)
    params['wv2'], params['bv2'] = lin(ks[6], D, D)
    params['wff'], params['bff'] = lin(ks[7], D, 1)
    return params


def pack_params(params):
    """Pack the 13 torch-layout tensors into a few lane-dense kernel operands.
    Done once, outside the per-call path (positional encoding included)."""
    return {
        'emb': params['emb'],                                           # (VOCAB, D) f32
        'pe': make_positional_encoding(D, SEQ),                         # (SEQ, D) f32
        # fused first-layer weight/bias: [k | q | v]
        'w1': jnp.concatenate([params['wk1'], params['wq1'], params['wv1']],
                              axis=1).astype(jnp.bfloat16),             # (D, 3D) bf16
        'b1': jnp.concatenate([params['bk1'], params['bq1'], params['bv1']],
                              axis=1),                                  # (1, 3D) f32
        # stacked second-layer weights; attention scale=100 folded into q branch
        'w2': jnp.stack([params['wk2'], 100.0 * params['wq2'], params['wv2']],
                        axis=0).astype(jnp.bfloat16),                   # (3, D, D) bf16
        'b2': jnp.concatenate([params['bk2'], 100.0 * params['bq2'], params['bv2']],
                              axis=1),                                  # (1, 3D) f32
        'wff': params['wff'].T,                                         # (1, D) f32
        'bff': params['bff'].reshape(1, 1),                             # (1, 1) f32 -> SMEM
    }


@jax.jit
def transformer_forward(x_ids: jnp.ndarray, packed: dict) -> jnp.ndarray:
    assert x_ids.shape == (1, SEQ), 'batchsize must be 1, seq must be %d' % SEQ

    # embedding gather + positional encoding (plain-JAX glue inside the same jit)
    h = jnp.take(packed['emb'], x_ids[0], axis=0) + packed['pe']        # (SEQ, D) f32
    h = h.astype(jnp.bfloat16)                                          # matmul operand

    out = pl.pallas_call(
        transformer_kernel,
        out_shape=jax.ShapeDtypeStruct((1, 1), jnp.float32),
        in_specs=[pl.BlockSpec(memory_space=pltpu.MemorySpace.VMEM)] * 6
                 + [pl.BlockSpec(memory_space=pltpu.MemorySpace.SMEM)],
        out_specs=pl.BlockSpec(memory_space=pltpu.MemorySpace.VMEM),
        compiler_params=pltpu.CompilerParams(vmem_limit_bytes=8 << 20),
    )(h, packed['w1'], packed['b1'], packed['w2'], packed['b2'],
      packed['wff'], packed['bff'])
    return out                                                          # (1, 1)


def transformer_forward_ref(x_ids: jnp.ndarray, params: dict) -> jnp.ndarray:
    """Pure-JAX f32 reference (exact torch semantics) for correctness checking."""
    h = jnp.take(params['emb'], x_ids[0], axis=0) + make_positional_encoding(D, SEQ)

    def mlp(w1, b1, w2, b2):
        return jnp.maximum(h @ w1 + b1, 0.0) @ w2 + b2

    k = mlp(params['wk1'], params['bk1'], params['wk2'], params['bk2'])
    q = mlp(params['wq1'], params['bq1'], params['wq2'], params['bq2'])
    v = mlp(params['wv1'], params['bv1'], params['wv2'], params['bv2'])
    s = (q @ k.T) * 100.0
    attn = jax.nn.softmax(s, axis=-1)
    y = attn @ v
    y = jnp.max(y, axis=0, keepdims=True)
    return jax.nn.sigmoid(y @ params['wff'] + params['bff'])


if __name__ == "__main__":
    key = jax.random.PRNGKey(0)
    k_param, k_inp = jax.random.split(key)

    params = init_params(k_param)
    packed = pack_params(params)
    x_ids = jax.random.randint(k_inp, (1, SEQ), 0, VOCAB, dtype=jnp.int32)

    out = transformer_forward(x_ids, packed)
    out = jax.block_until_ready(out)

    ref = transformer_forward_ref(x_ids, params)
    assert out.shape == (1, 1)
    # bf16 matmul operands (f32 accumulation) -> relaxed tolerance vs the f32 reference
    assert jnp.allclose(out, ref, atol=1e-2, rtol=1e-2), (out, ref)

    print("KERNEL_OK")
</pallas_src>

<mosaic_0001>
module attributes {stable_mosaic.version = 11 : i64} {
  func.func @transformer_kernel(%arg0: memref<45x256xbf16, #tpu.memory_space<vmem>>, %arg1: memref<256x768xbf16, #tpu.memory_space<vmem>>, %arg2: memref<1x768xf32, #tpu.memory_space<vmem>>, %arg3: memref<3x256x256xbf16, #tpu.memory_space<vmem>>, %arg4: memref<1x768xf32, #tpu.memory_space<vmem>>, %arg5: memref<1x256xf32, #tpu.memory_space<vmem>>, %arg6: memref<1x1xf32, #tpu.memory_space<smem>>, %arg7: memref<1x1xf32, #tpu.memory_space<vmem>>) attributes {dimension_semantics = [], scalar_prefetch = 0 : i64, scratch_operands = 0 : i64, tpu.core_type = #tpu.core_type<tc>} {
    %c0 = arith.constant 0 : index
    %c0_0 = arith.constant 0 : index
    %0 = vector.load %arg0[%c0, %c0_0] : memref<45x256xbf16, #tpu.memory_space<vmem>>, vector<45x256xbf16>
    %c0_1 = arith.constant 0 : index
    %c0_2 = arith.constant 0 : index
    %1 = vector.load %arg1[%c0_1, %c0_2] : memref<256x768xbf16, #tpu.memory_space<vmem>>, vector<256x768xbf16>
    %cst = arith.constant dense<0.000000e+00> : vector<45x768xf32>
    %2 = tpu.matmul %0, %1, %cst {dimension_numbers = #tpu.dot_dimension_numbers<[1], [0], [0], [1], [0, 0, 1, 1], [], []>} : vector<45x256xbf16>, vector<256x768xbf16>, vector<45x768xf32> -> vector<45x768xf32>
    %c0_3 = arith.constant 0 : index
    %c0_4 = arith.constant 0 : index
    %3 = vector.load %arg2[%c0_3, %c0_4] : memref<1x768xf32, #tpu.memory_space<vmem>>, vector<1x768xf32>
    %4 = vector.broadcast %3 : vector<1x768xf32> to vector<45x768xf32>
    %5 = arith.addf %2, %4 : vector<45x768xf32>
    %cst_5 = arith.constant 0.000000e+00 : f32
    %6 = vector.broadcast %cst_5 : f32 to vector<45x768xf32>
    %7 = arith.maximumf %5, %6 : vector<45x768xf32>
    %8 = arith.truncf %7 : vector<45x768xf32> to vector<45x768xbf16>
    %9 = vector.extract_strided_slice %8 {offsets = [0, 0], sizes = [45, 256], strides = [1, 1]} : vector<45x768xbf16> to vector<45x256xbf16>
    %c0_6 = arith.constant 0 : index
    %c0_7 = arith.constant 0 : index
    %c0_8 = arith.constant 0 : index
    %10 = vector.load %arg3[%c0_6, %c0_7, %c0_8] : memref<3x256x256xbf16, #tpu.memory_space<vmem>>, vector<1x256x256xbf16>
    %11 = vector.shape_cast %10 : vector<1x256x256xbf16> to vector<256x256xbf16>
    %cst_9 = arith.constant dense<0.000000e+00> : vector<45x256xf32>
    %12 = tpu.matmul %9, %11, %cst_9 {dimension_numbers = #tpu.dot_dimension_numbers<[1], [0], [0], [1], [0, 0, 1, 1], [], []>} : vector<45x256xbf16>, vector<256x256xbf16>, vector<45x256xf32> -> vector<45x256xf32>
    %c0_10 = arith.constant 0 : index
    %c0_11 = arith.constant 0 : index
    %13 = vector.load %arg4[%c0_10, %c0_11] : memref<1x768xf32, #tpu.memory_space<vmem>>, vector<1x256xf32>
    %14 = vector.broadcast %13 : vector<1x256xf32> to vector<45x256xf32>
    %15 = arith.addf %12, %14 : vector<45x256xf32>
    %16 = vector.extract_strided_slice %8 {offsets = [0, 256], sizes = [45, 256], strides = [1, 1]} : vector<45x768xbf16> to vector<45x256xbf16>
    %c1 = arith.constant 1 : index
    %c0_12 = arith.constant 0 : index
    %c0_13 = arith.constant 0 : index
    %17 = vector.load %arg3[%c1, %c0_12, %c0_13] : memref<3x256x256xbf16, #tpu.memory_space<vmem>>, vector<1x256x256xbf16>
    %18 = vector.shape_cast %17 : vector<1x256x256xbf16> to vector<256x256xbf16>
    %cst_14 = arith.constant dense<0.000000e+00> : vector<45x256xf32>
    %19 = tpu.matmul %16, %18, %cst_14 {dimension_numbers = #tpu.dot_dimension_numbers<[1], [0], [0], [1], [0, 0, 1, 1], [], []>} : vector<45x256xbf16>, vector<256x256xbf16>, vector<45x256xf32> -> vector<45x256xf32>
    %c0_15 = arith.constant 0 : index
    %c256 = arith.constant 256 : index
    %20 = vector.load %arg4[%c0_15, %c256] : memref<1x768xf32, #tpu.memory_space<vmem>>, vector<1x256xf32>
    %21 = vector.broadcast %20 : vector<1x256xf32> to vector<45x256xf32>
    %22 = arith.addf %19, %21 : vector<45x256xf32>
    %23 = vector.extract_strided_slice %8 {offsets = [0, 512], sizes = [45, 256], strides = [1, 1]} : vector<45x768xbf16> to vector<45x256xbf16>
    %c2 = arith.constant 2 : index
    %c0_16 = arith.constant 0 : index
    %c0_17 = arith.constant 0 : index
    %24 = vector.load %arg3[%c2, %c0_16, %c0_17] : memref<3x256x256xbf16, #tpu.memory_space<vmem>>, vector<1x256x256xbf16>
    %25 = vector.shape_cast %24 : vector<1x256x256xbf16> to vector<256x256xbf16>
    %cst_18 = arith.constant dense<0.000000e+00> : vector<45x256xf32>
    %26 = tpu.matmul %23, %25, %cst_18 {dimension_numbers = #tpu.dot_dimension_numbers<[1], [0], [0], [1], [0, 0, 1, 1], [], []>} : vector<45x256xbf16>, vector<256x256xbf16>, vector<45x256xf32> -> vector<45x256xf32>
    %c0_19 = arith.constant 0 : index
    %c512 = arith.constant 512 : index
    %27 = vector.load %arg4[%c0_19, %c512] : memref<1x768xf32, #tpu.memory_space<vmem>>, vector<1x256xf32>
    %28 = vector.broadcast %27 : vector<1x256xf32> to vector<45x256xf32>
    %29 = arith.addf %26, %28 : vector<45x256xf32>
    %30 = arith.truncf %22 : vector<45x256xf32> to vector<45x256xbf16>
    %31 = arith.truncf %15 : vector<45x256xf32> to vector<45x256xbf16>
    %cst_20 = arith.constant dense<0.000000e+00> : vector<45x45xf32>
    %32 = tpu.matmul %30, %31, %cst_20 {dimension_numbers = #tpu.dot_dimension_numbers<[1], [1], [0], [0], [0, 0, 1, 0], [], []>} : vector<45x256xbf16>, vector<45x256xbf16>, vector<45x45xf32> -> vector<45x45xf32>
    %cst_21 = arith.constant dense<0xFF800000> : vector<45xf32>
    %33 = vector.multi_reduction <maximumf>, %32, %cst_21 [1] : vector<45x45xf32> to vector<45xf32>
    %34 = vector.shape_cast %33 : vector<45xf32> to vector<45x1xf32>
    %35 = vector.broadcast %34 : vector<45x1xf32> to vector<45x45xf32>
    %36 = arith.subf %32, %35 : vector<45x45xf32>
    %37 = math.exp %36 : vector<45x45xf32>
    %cst_22 = arith.constant dense<0.000000e+00> : vector<45xf32>
    %38 = vector.multi_reduction <add>, %37, %cst_22 [1] : vector<45x45xf32> to vector<45xf32>
    %39 = vector.shape_cast %38 : vector<45xf32> to vector<45x1xf32>
    %40 = vector.broadcast %39 : vector<45x1xf32> to vector<45x45xf32>
    %41 = arith.divf %37, %40 : vector<45x45xf32>
    %42 = arith.truncf %41 : vector<45x45xf32> to vector<45x45xbf16>
    %43 = arith.truncf %29 : vector<45x256xf32> to vector<45x256xbf16>
    %cst_23 = arith.constant dense<0.000000e+00> : vector<45x256xf32>
    %44 = tpu.matmul %42, %43, %cst_23 {dimension_numbers = #tpu.dot_dimension_numbers<[1], [0], [0], [1], [0, 0, 1, 1], [], []>} : vector<45x45xbf16>, vector<45x256xbf16>, vector<45x256xf32> -> vector<45x256xf32>
    %cst_24 = arith.constant dense<0xFF800000> : vector<256xf32>
    %45 = vector.multi_reduction <maximumf>, %44, %cst_24 [0] : vector<45x256xf32> to vector<256xf32>
    %46 = vector.shape_cast %45 : vector<256xf32> to vector<1x256xf32>
    %c0_25 = arith.constant 0 : index
    %c0_26 = arith.constant 0 : index
    %47 = vector.load %arg5[%c0_25, %c0_26] : memref<1x256xf32, #tpu.memory_space<vmem>>, vector<1x256xf32>
    %48 = arith.mulf %46, %47 : vector<1x256xf32>
    %cst_27 = arith.constant dense<0.000000e+00> : vector<1xf32>
    %49 = vector.multi_reduction <add>, %48, %cst_27 [1] : vector<1x256xf32> to vector<1xf32>
    %50 = vector.shape_cast %49 : vector<1xf32> to vector<1x1xf32>
    %c0_28 = arith.constant 0 : index
    %c0_29 = arith.constant 0 : index
    %51 = memref.load %arg6[%c0_28, %c0_29] : memref<1x1xf32, #tpu.memory_space<smem>>
    %52 = vector.broadcast %51 : f32 to vector<1x1xf32>
    %53 = arith.addf %50, %52 : vector<1x1xf32>
    %54 = arith.negf %53 : vector<1x1xf32>
    %55 = math.exp %54 : vector<1x1xf32>
    %cst_30 = arith.constant 1.000000e+00 : f32
    %56 = vector.broadcast %cst_30 : f32 to vector<1x1xf32>
    %57 = arith.addf %56, %55 : vector<1x1xf32>
    %58 = arith.divf %56, %57 : vector<1x1xf32>
    %c0_31 = arith.constant 0 : index
    %c0_32 = arith.constant 0 : index
    %59 = vector.load %arg7[%c0_31, %c0_32] : memref<1x1xf32, #tpu.memory_space<vmem>>, vector<1x1xf32>
    tpu.vector_store %arg7[%c0_31, %c0_32], %58 {strides = array<i32>} : memref<1x1xf32, #tpu.memory_space<vmem>>, vector<1x1xf32>,
    return
  }
}

</mosaic_0001>

<bundles_post_ra>
// kernel: transformer_forward.1
= control target key start
LH: loop header
LB: loop body
LE: loop exit
PB: predicated region body
PF: predicated region fallthrough
CT: control target
= control target key end

     0   :  { %13 = vsyncpa [#allocation4], 0  ;;  %s3114_s0 = inlined_call_operand.vmem [shape: bf16[45,256], index: 0, kind: input, shape index: {}]   ;;  %s3115_s1 = inlined_call_operand.vmem [shape: bf16[256,768], index: 1, kind: input, shape index: {}]   ;;  %s3116_s2 = inlined_call_operand.vmem [shape: f32[1,768], index: 2, kind: input, shape index: {}]   ;;  %s3117_s3 = inlined_call_operand.hbm [shape: bf16[3,256,256], index: 3, kind: input, shape index: {}]   ;;  %s3118_s4 = inlined_call_operand.vmem [shape: f32[1,768], index: 4, kind: input, shape index: {}]   ;;  %s3119_s5 = inlined_call_operand.vmem [shape: f32[1,256], index: 5, kind: input, shape index: {}]   ;;  %s3120_s6 = inlined_call_operand.<no memory space> [shape: f32[1,1], index: 6, kind: input, shape index: {}]   ;;  %s3121_s7 = inlined_call_operand.hbm [shape: f32[1,1], index: 7, kind: output, shape index: {}]  }
   0x1   :  { %14 = vsyncpa [#allocation5], 0  ;;  %s2613_s24 = smov [#allocation3]   ;;  %s2565_s28 = scalar_lea.hbm %s3117_s3, 12288 }
   0x2   :  { %s26_s25 = sshll.u32 %s2613_s24, 4  ;;  %p2566_p0 = scmp.ne.s32.totalorder %s3117_s3, %s2565_s28  ;;  %s27_s25 = int_to_ptr.vmem [resolvable:$true] %s26_s25 }
   0x3   :  { %p2569_p1 = scmp.lt.u32.totalorder %s2565_s28, %s3117_s3 }
   0x5   :  { %p2571_p2 = pnand %p2569_p1, %p2566_p0 }
   0x7   :  { %2574 = shalt.err (!%p2571_p2)
}
   0x8   :  { %s2575_s10 = scalar_lea.vmem %s27_s25, 12288  ;;  %p2580_p4 = scmp.lt.s32.totalorder %s27_s25, %s27_s25 }
   0x9   :  { %p2576_p3 = scmp.ne.s32.totalorder %s27_s25, %s2575_s10  ;;  %p2581_p5 = scmp.lt.s32.totalorder %s2575_s10, %s2575_s10 }
   0xb   :  { %p2582_p6 = por %p2581_p5, %p2580_p4 }
   0xd   :  { %p2583_p7 = pnand %p2582_p6, %p2576_p3 }
   0xf   :  { %2586 = shalt.err (!%p2583_p7)
}
  0x10   :  { %s2614_s11 = smov 128   ;;  %s2615_s12 = smov 8  }
  0x11   :  { %32 = dma.hbm_to_vmem [thread:$0]  %s3117_s3, 12288, %s27_s25, [#allocation4], %s2614_s11, %s2614_s11, %s2615_s12  }
  0x12   :  { %2609 = dma.done.wait [#allocation4], 12288  }
  0x13   :  { %2610 = vsyncadd [#allocation4], 4294955008  ;;  %v2240_v0 = vld [vmem:[%s3115_s1 + $0x4] ss:$24 sps:$4 sm:$0xff]   ;;  %v2242_v1 = vld [vmem:[%s3115_s1] ss:$24 sps:$4 sm:$0xff]  }
  0x14   :  { %687 = vmatprep.subr.bf16.mxu0 %v2240_v0  ;;  %v2243_v2 = vld [vmem:[%s3115_s1 + $0x34] ss:$24 sps:$4 sm:$0xff]   ;;  %v2245_v3 = vld [vmem:[%s3115_s1 + $0x30] ss:$24 sps:$4 sm:$0xff]   ;;  %v2246_v4 = vld [vmem:[%s3115_s1 + $0x64] ss:$24 sps:$4 sm:$0xff]  }
  0x15   :  { %688 = vmatpush1.bf16.msra.mxu0 %v2242_v1  ;;  %v2248_v5 = vld [vmem:[%s3115_s1 + $0x60] ss:$24 sps:$4 sm:$0xff]   ;;  %v2255_v6 = vld [vmem:[%s3115_s1 + $0xc] ss:$24 sps:$4 sm:$0xff]   ;;  %v2261_v9 = vld [vmem:[%s3115_s1 + $0x3c] ss:$24 sps:$4 sm:$0xff]  }
  0x16   :  { %689 = vmatprep.subr.bf16.mxu0 %v2243_v2  ;;  %v2257_v7 = vld [vmem:[%s3115_s1 + $0x8] ss:$24 sps:$4 sm:$0xff]   ;;  %v2249_v8 = vld [vmem:[%s3115_s1 + $0x94] ss:$24 sps:$4 sm:$0xff]   ;;  %750 = vmatprep.subr.bf16.mxu1 %v2255_v6  ;;  %v2263_v10 = vld [vmem:[%s3115_s1 + $0x38] ss:$24 sps:$4 sm:$0xff]  }
  0x17   :  { %751 = vmatpush1.bf16.msra.mxu1 %v2257_v7  ;;  %v2251_v11 = vld [vmem:[%s3115_s1 + $0x90] ss:$24 sps:$4 sm:$0xff]   ;;  %v2252_v12 = vld [vmem:[%s3115_s1 + $0xc4] ss:$24 sps:$4 sm:$0xff]   ;;  %v2254_v15 = vld [vmem:[%s3115_s1 + $0xc0] ss:$24 sps:$4 sm:$0xff]  }
  0x18   :  { %752 = vmatprep.subr.bf16.mxu1 %v2261_v9  ;;  %v2267_v13 = vld [vmem:[%s3115_s1 + $0x6c] ss:$24 sps:$4 sm:$0xff]   ;;  %v2269_v14 = vld [vmem:[%s3115_s1 + $0x68] ss:$24 sps:$4 sm:$0xff]   ;;  %v2273_v16 = vld [vmem:[%s3115_s1 + $0x9c] ss:$24 sps:$4 sm:$0xff]  }
  0x19   :  { %690 = vmatpush1.bf16.msra.mxu0 %v2245_v3  ;;  %v2258_v17 = vld [vmem:[%s3115_s1 + $0xf4] ss:$24 sps:$4 sm:$0xff]   ;;  %v2275_v18 = vld [vmem:[%s3115_s1 + $0x98] ss:$24 sps:$4 sm:$0xff]   ;;  %v2264_v21 = vld [vmem:[%s3115_s1 + $0x124] ss:$24 sps:$4 sm:$0xff]  }
  0x1a   :  { %691 = vmatprep.subr.bf16.mxu0 %v2246_v4  ;;  %v2260_v19 = vld [vmem:[%s3115_s1 + $0xf0] ss:$24 sps:$4 sm:$0xff]   ;;  %v2279_v20 = vld [vmem:[%s3115_s1 + $0xcc] ss:$24 sps:$4 sm:$0xff]   ;;  %v2266_v23 = vld [vmem:[%s3115_s1 + $0x120] ss:$24 sps:$4 sm:$0xff]  }
  0x1b   :  { %753 = vmatpush1.bf16.msra.mxu1 %v2263_v10  ;;  %v2281_v22 = vld [vmem:[%s3115_s1 + $0xc8] ss:$24 sps:$4 sm:$0xff]   ;;  %v2285_v24 = vld [vmem:[%s3115_s1 + $0xfc] ss:$24 sps:$4 sm:$0xff]   ;;  %v2287_v26 = vld [vmem:[%s3115_s1 + $0xf8] ss:$24 sps:$4 sm:$0xff]  }
  0x1c   :  { %754 = vmatprep.subr.bf16.mxu1 %v2267_v13  ;;  %v2270_v25 = vld [vmem:[%s3115_s1 + $0x154] ss:$24 sps:$4 sm:$0xff]   ;;  %v2272_v27 = vld [vmem:[%s3115_s1 + $0x150] ss:$24 sps:$4 sm:$0xff]   ;;  %v2276_v29 = vld [vmem:[%s3115_s1 + $0x184] ss:$24 sps:$4 sm:$0xff]  }
  0x1d   :  { %692 = vmatpush1.bf16.msra.mxu0 %v2248_v5  ;;  %v2291_v28 = vld [vmem:[%s3115_s1 + $0x12c] ss:$24 sps:$4 sm:$0xff]   ;;  %v2293_v30 = vld [vmem:[%s3115_s1 + $0x128] ss:$24 sps:$4 sm:$0xff]   ;;  %v2297_v32 = vld [vmem:[%s3115_s1 + $0x15c] ss:$24 sps:$4 sm:$0xff]  }
  0x1e   :  { %693 = vmatprep.subr.bf16.mxu0 %v2249_v8  ;;  %v2278_v31 = vld [vmem:[%s3115_s1 + $0x180] ss:$24 sps:$4 sm:$0xff]   ;;  %v2282_v33 = vld [vmem:[%s3115_s1 + $0x1b4] ss:$24 sps:$4 sm:$0xff]   ;;  %v2284_v35 = vld [vmem:[%s3115_s1 + $0x1b0] ss:$24 sps:$4 sm:$0xff]  }
  0x1f   :  { %755 = vmatpush1.bf16.msra.mxu1 %v2269_v14  ;;  %v2299_v34 = vld [vmem:[%s3115_s1 + $0x158] ss:$24 sps:$4 sm:$0xff]   ;;  %v2303_v36 = vld [vmem:[%s3115_s1 + $0x18c] ss:$24 sps:$4 sm:$0xff]   ;;  %v2305_v38 = vld [vmem:[%s3115_s1 + $0x188] ss:$24 sps:$4 sm:$0xff]  }
  0x20   :  { %756 = vmatprep.subr.bf16.mxu1 %v2273_v16  ;;  %v2288_v37 = vld [vmem:[%s3115_s1 + $0x1e4] ss:$24 sps:$4 sm:$0xff]   ;;  %v2290_v40 = vld [vmem:[%s3115_s1 + $0x1e0] ss:$24 sps:$4 sm:$0xff]   ;;  %v2294_v42 = vld [vmem:[%s3115_s1 + $0x214] ss:$24 sps:$4 sm:$0xff]  }
  0x21   :  { %694 = vmatpush1.bf16.msra.mxu0 %v2251_v11  ;;  %v2791_v39 = vld [vmem:[%s3114_s0 + $0x4] ss:$8 sps:$4 sm:$0xff]   ;;  %v2309_v41 = vld [vmem:[%s3115_s1 + $0x1bc] ss:$24 sps:$4 sm:$0xff]   ;;  %v2311_v43 = vld [vmem:[%s3115_s1 + $0x1b8] ss:$24 sps:$4 sm:$0xff]  }
  0x22   :  { %695 = vmatprep.subr.bf16.mxu0 %v2252_v12  ;;  %719 = vmatprep.mubr.bf16.mxu0 %v2791_v39  ;;  %v2296_v44 = vld [vmem:[%s3115_s1 + $0x210] ss:$24 sps:$4 sm:$0xff]   ;;  %v2315_v45 = vld [vmem:[%s3115_s1 + $0x1ec] ss:$24 sps:$4 sm:$0xff]   ;;  %v2302_v47 = vld [vmem:[%s3115_s1 + $0x240] ss:$24 sps:$4 sm:$0xff]  }
  0x23   :  { %757 = vmatpush1.bf16.msra.mxu1 %v2275_v18  ;;  %782 = vmatprep.mubr.bf16.mxu1 %v2791_v39  ;;  %v2300_v46 = vld [vmem:[%s3115_s1 + $0x244] ss:$24 sps:$4 sm:$0xff]   ;;  %v2317_v48 = vld [vmem:[%s3115_s1 + $0x1e8] ss:$24 sps:$4 sm:$0xff]   ;;  %v2306_v50 = vld [vmem:[%s3115_s1 + $0x274] ss:$24 sps:$4 sm:$0xff]  }
  0x24   :  { %758 = vmatprep.subr.bf16.mxu1 %v2279_v20  ;;  %v2321_v49 = vld [vmem:[%s3115_s1 + $0x21c] ss:$24 sps:$4 sm:$0xff]   ;;  %v2308_v51 = vld [vmem:[%s3115_s1 + $0x270] ss:$24 sps:$4 sm:$0xff]   ;;  %v2327_v53 = vld [vmem:[%s3115_s1 + $0x24c] ss:$24 sps:$4 sm:$0xff]  }
  0x25   :  { %696 = vmatpush1.bf16.msra.mxu0 %v2254_v15  ;;  %v2323_v52 = vld [vmem:[%s3115_s1 + $0x218] ss:$24 sps:$4 sm:$0xff]   ;;  %v2312_v54 = vld [vmem:[%s3115_s1 + $0x2a4] ss:$24 sps:$4 sm:$0xff]   ;;  %v2329_v56 = vld [vmem:[%s3115_s1 + $0x248] ss:$24 sps:$4 sm:$0xff]  }
  0x26   :  { %697 = vmatprep.subr.bf16.mxu0 %v2258_v17  ;;  %v2314_v55 = vld [vmem:[%s3115_s1 + $0x2a0] ss:$24 sps:$4 sm:$0xff]   ;;  %v2330_v57 = vld [vmem:[%s3115_s1 + $0x27c] ss:$24 sps:$4 sm:$0xff]   ;;  %v2320_v59 = vld [vmem:[%s3115_s1 + $0x2d0] ss:$24 sps:$4 sm:$0xff]  }
  0x27   :  { %759 = vmatpush1.bf16.msra.mxu1 %v2281_v22  ;;  %v2318_v58 = vld [vmem:[%s3115_s1 + $0x2d4] ss:$24 sps:$4 sm:$0xff]   ;;  %v2332_v60 = vld [vmem:[%s3115_s1 + $0x278] ss:$24 sps:$4 sm:$0xff]   ;;  %v2867_v63 = vld [vmem:[%s3114_s0] ss:$8 sps:$4 sm:$0xff]  }
  0x28   :  { %760 = vmatprep.subr.bf16.mxu1 %v2285_v24  ;;  %v2336_v61 = vld [vmem:[%s3115_s1 + $0x2ac] ss:$24 sps:$4 sm:$0xff]   ;;  %v2872_v0 = vld [vmem:[%s3114_s0 + $0x14] ss:$8 sps:$4 sm:$0xff]   ;;  %v2338_v1 = vld [vmem:[%s3115_s1 + $0x2a8] ss:$24 sps:$4 sm:$0xff]  }
  0x29   :  { %698 = vmatpush1.bf16.msra.mxu0 %v2260_v19  ;;  %v2347_v62 = vld [vmem:[%s3115_s1 + $0x14] ss:$24 sps:$4 sm:$0xff]   ;;  %v2345_v3 = vld [vmem:[%s3115_s1 + $0x10] ss:$24 sps:$4 sm:$0xff]   ;;  %v2350_v4 = vld [vmem:[%s3115_s1 + $0x44] ss:$24 sps:$4 sm:$0xff]  }
  0x2a   :  { %699 = vmatprep.subr.bf16.mxu0 %v2264_v21  ;;  %v2339_v2 = vld [vmem:[%s3115_s1 + $0x2dc] ss:$24 sps:$4 sm:$0xff]   ;;  %v2341_v5 = vld [vmem:[%s3115_s1 + $0x2d8] ss:$24 sps:$4 sm:$0xff]   ;;  %v2383_v6 = vld [vmem:[#allocation3 + $0x4] ss:$8 sps:$4 sm:$0xff]  }
  0x2b   :  { %761 = vmatpush1.bf16.msra.mxu1 %v2287_v26  ;;  %v2348_v7 = vld [vmem:[%s3115_s1 + $0x40] ss:$24 sps:$4 sm:$0xff]   ;;  %v2353_v9 = vld [vmem:[%s3115_s1 + $0x74] ss:$24 sps:$4 sm:$0xff]   ;;  %v2351_v11 = vld [vmem:[%s3115_s1 + $0x70] ss:$24 sps:$4 sm:$0xff]  }
  0x2c   :  { %762 = vmatprep.subr.bf16.mxu1 %v2291_v28  ;;  %v2897_v8 = vld [vmem:[%s3114_s0 + $0x10] ss:$8 sps:$4 sm:$0xff]   ;;  %v2905_v10 = vld [vmem:[%s3114_s0 + $0x24] ss:$8 sps:$4 sm:$0x7f]   ;;  %vm1888_vm0 = vcmask 1045504  }
  0x2d   :  { %700 = vmatpush1.bf16.msra.mxu0 %v2266_v23  ;;  %v2381_v12 = vld [vmem:[#allocation3] ss:$8 sps:$4 sm:$0xff]   ;;  %v2389_v13 = vld [vmem:[#allocation3 + $0x14] ss:$8 sps:$4 sm:$0xff]   ;;  %v2387_v16 = vld [vmem:[#allocation3 + $0x10] ss:$8 sps:$4 sm:$0xff]  }
  0x2e   :  { %701 = vmatprep.subr.bf16.mxu0 %v2270_v25  ;;  %v2356_v14 = vld [vmem:[%s3115_s1 + $0xa4] ss:$24 sps:$4 sm:$0xff]   ;;  %v2354_v15 = vld [vmem:[%s3115_s1 + $0xa0] ss:$24 sps:$4 sm:$0xff]   ;;  %v2359_v18 = vld [vmem:[%s3115_s1 + $0xd4] ss:$24 sps:$4 sm:$0xff]  }
  0x2f   :  { %763 = vmatpush1.bf16.msra.mxu1 %v2293_v30  ;;  %v2395_v17 = vld [vmem:[#allocation3 + $0x24] ss:$8 sps:$4 sm:$0xff]   ;;  %v2926_v19 = vld [vmem:[%s3114_s0 + $0x20] ss:$8 sps:$4 sm:$0x7f]   ;;  %vm1889_vm1 = vcmask 1046528  }
  0x30   :  { %764 = vmatprep.subr.bf16.mxu1 %v2297_v32  ;;  %v2357_v20 = vld [vmem:[%s3115_s1 + $0xd0] ss:$24 sps:$4 sm:$0xff]   ;;  %v2401_v22 = vld [vmem:[#allocation3 + $0x34] ss:$8 sps:$4 sm:$0xff]   ;;  %v2360_v24 = vld [vmem:[%s3115_s1 + $0x100] ss:$24 sps:$4 sm:$0xff]  }
  0x31   :  { %702 = vmatpush1.bf16.msra.mxu0 %v2272_v27  ;;  %v2393_v21 = vld [vmem:[#allocation3 + $0x20] ss:$8 sps:$4 sm:$0xff]   ;;  %v2362_v23 = vld [vmem:[%s3115_s1 + $0x104] ss:$24 sps:$4 sm:$0xff]   ;;  %v2399_v25 = vld [vmem:[#allocation3 + $0x30] ss:$8 sps:$4 sm:$0xff]  }
  0x32   :  { %703 = vmatprep.subr.bf16.mxu0 %v2276_v29  ;;  %v2407_v26 = vld [vmem:[#allocation3 + $0x44] ss:$8 sps:$4 sm:$0xff]   ;;  %v2363_v28 = vld [vmem:[%s3115_s1 + $0x130] ss:$24 sps:$4 sm:$0xff]   ;;  %v2413_v30 = vld [vmem:[#allocation3 + $0x54] ss:$8 sps:$4 sm:$0xff]  }
  0x33   :  { %765 = vmatpush1.bf16.msra.mxu1 %v2299_v34  ;;  %v2365_v27 = vld [vmem:[%s3115_s1 + $0x134] ss:$24 sps:$4 sm:$0xff]   ;;  %v2405_v29 = vld [vmem:[#allocation3 + $0x40] ss:$8 sps:$4 sm:$0xff]   ;;  %vm1802_vm2 = vcmask 367616   ;;  %vm1818_vm3 = vcmask 364544  }
  0x34   :  { %766 = vmatprep.subr.bf16.mxu1 %v2303_v36  ;;  %v2366_v32 = vld [vmem:[%s3115_s1 + $0x160] ss:$24 sps:$4 sm:$0xff]   ;;  %v2419_v34 = vld [vmem:[#allocation3 + $0x64] ss:$8 sps:$4 sm:$0xff]   ;;  %v2369_v36 = vld [vmem:[%s3115_s1 + $0x190] ss:$24 sps:$4 sm:$0xff]  }
  0x35   :  { %704 = vmatpush1.bf16.msra.mxu0 %v2278_v31  ;;  %v2368_v31 = vld [vmem:[%s3115_s1 + $0x164] ss:$24 sps:$4 sm:$0xff]   ;;  %vm1964_vm4 = vcmask 1044480   ;;  %vm2000_vm5 = vcmask 1040384   ;;  %vm2015_vm6 = vcmask 0  }
  0x36   :  { %705 = vmatprep.subr.bf16.mxu0 %v2282_v33  ;;  %v2411_v33 = vld [vmem:[#allocation3 + $0x50] ss:$8 sps:$4 sm:$0xff]  }
  0x37   :  { %767 = vmatpush1.bf16.msra.mxu1 %v2305_v38  ;;  %v2425_v38 = vld [vmem:[#allocation3 + $0x74] ss:$8 sps:$4 sm:$0xff]  }
  0x38   :  { %768 = vmatprep.subr.bf16.mxu1 %v2309_v41  ;;  %v2423_v41 = vld [vmem:[#allocation3 + $0x70] ss:$8 sps:$4 sm:$0xff]  }
  0x39   :  { %706 = vmatpush1.bf16.msra.mxu0 %v2284_v35  ;;  %v2371_v35 = vld [vmem:[%s3115_s1 + $0x194] ss:$24 sps:$4 sm:$0xff]  }
  0x3a   :  { %707 = vmatprep.subr.bf16.mxu0 %v2288_v37  ;;  %v2417_v37 = vld [vmem:[#allocation3 + $0x60] ss:$8 sps:$4 sm:$0xff]  }
  0x3b   :  { %769 = vmatpush1.bf16.msra.mxu1 %v2311_v43  ;;  %v2431_v43 = vld [vmem:[#allocation3 + $0x84] ss:$8 sps:$4 sm:$0xff]  }
  0x3c   :  { %770 = vmatprep.subr.bf16.mxu1 %v2315_v45  ;;  %v2375_v45 = vld [vmem:[%s3115_s1 + $0x1f0] ss:$24 sps:$4 sm:$0xff]  }
  0x3d   :  { %708 = vmatpush1.bf16.msra.mxu0 %v2290_v40  ;;  %v2372_v40 = vld [vmem:[%s3115_s1 + $0x1c0] ss:$24 sps:$4 sm:$0xff]  }
  0x3e   :  { %709 = vmatprep.subr.bf16.mxu0 %v2294_v42  ;;  %v2377_v42 = vld [vmem:[%s3115_s1 + $0x1f4] ss:$24 sps:$4 sm:$0xff]  }
  0x3f   :  { %771 = vmatpush1.bf16.msra.mxu1 %v2317_v48  ;;  %v2435_v48 = vld [vmem:[#allocation3 + $0x90] ss:$8 sps:$4 sm:$0xff]  }
  0x40   :  { %772 = vmatprep.subr.bf16.mxu1 %v2321_v49  ;;  %v2378_v49 = vld [vmem:[%s3115_s1 + $0x220] ss:$24 sps:$4 sm:$0xff]  }
  0x41   :  { %710 = vmatpush1.bf16.msra.mxu0 %v2296_v44  ;;  %v2429_v44 = vld [vmem:[#allocation3 + $0x80] ss:$8 sps:$4 sm:$0xff]  }
  0x42   :  { %711 = vmatprep.subr.bf16.mxu0 %v2300_v46  ;;  %v2437_v46 = vld [vmem:[#allocation3 + $0x94] ss:$8 sps:$4 sm:$0xff]  }
  0x43   :  { %773 = vmatpush1.bf16.msra.mxu1 %v2323_v52  ;;  %v2441_v52 = vld [vmem:[#allocation3 + $0xa0] ss:$8 sps:$4 sm:$0xff]  }
  0x44   :  { %774 = vmatprep.subr.bf16.mxu1 %v2327_v53  ;;  %v2384_v53 = vld [vmem:[%s3115_s1 + $0x250] ss:$24 sps:$4 sm:$0xff]  }
  0x45   :  { %712 = vmatpush1.bf16.msra.mxu0 %v2302_v47  ;;  %v2380_v47 = vld [vmem:[%s3115_s1 + $0x224] ss:$24 sps:$4 sm:$0xff]  }
  0x46   :  { %713 = vmatprep.subr.bf16.mxu0 %v2306_v50  ;;  %v2443_v50 = vld [vmem:[#allocation3 + $0xa4] ss:$8 sps:$4 sm:$0xff]  }
  0x47   :  { %775 = vmatpush1.bf16.msra.mxu1 %v2329_v56  ;;  %v2447_v56 = vld [vmem:[#allocation3 + $0xb0] ss:$8 sps:$4 sm:$0xff]  }
  0x48   :  { %776 = vmatprep.subr.bf16.mxu1 %v2330_v57  ;;  %v2390_v57 = vld [vmem:[%s3115_s1 + $0x280] ss:$24 sps:$4 sm:$0xff]  }
  0x49   :  { %714 = vmatpush1.bf16.msra.mxu0 %v2308_v51  ;;  %v2386_v51 = vld [vmem:[%s3115_s1 + $0x254] ss:$24 sps:$4 sm:$0xff]  }
  0x4a   :  { %715 = vmatprep.subr.bf16.mxu0 %v2312_v54  ;;  %v2449_v54 = vld [vmem:[#allocation3 + $0xb4] ss:$8 sps:$4 sm:$0xff]  }
  0x4b   :  { %777 = vmatpush1.bf16.msra.mxu1 %v2332_v60  ;;  %v2453_v60 = vld [vmem:[#allocation3 + $0xc0] ss:$8 sps:$4 sm:$0xff]  }
  0x4c   :  { %778 = vmatprep.subr.bf16.mxu1 %v2336_v61  ;;  %v2396_v61 = vld [vmem:[%s3115_s1 + $0x2b0] ss:$24 sps:$4 sm:$0xff]  }
  0x4d   :  { %716 = vmatpush1.bf16.msra.mxu0 %v2314_v55  ;;  %v2392_v55 = vld [vmem:[%s3115_s1 + $0x284] ss:$24 sps:$4 sm:$0xff]  }
  0x4e   :  { %717 = vmatprep.subr.bf16.mxu0 %v2318_v58  ;;  %v2455_v58 = vld [vmem:[#allocation3 + $0xc4] ss:$8 sps:$4 sm:$0xff]  }
  0x4f   :  { %779 = vmatpush1.bf16.msra.mxu1 %v2338_v1  ;;  %v2404_v1 = vld [vmem:[%s3115_s1 + $0x2e4] ss:$24 sps:$4 sm:$0xff]  }
  0x50   :  { %780 = vmatprep.subr.bf16.mxu1 %v2339_v2  ;;  %v2459_v2 = vld [vmem:[#allocation3 + $0xd0] ss:$8 sps:$4 sm:$0xff]  }
  0x51   :  { %718 = vmatpush1.bf16.msra.mxu0 %v2320_v59  ;;  %v2398_v59 = vld [vmem:[%s3115_s1 + $0x2b4] ss:$24 sps:$4 sm:$0xff]  }
  0x52   :  { %813 = vmatprep.subr.bf16.mxu0 %v2347_v62  ;;  %v2461_v62 = vld [vmem:[#allocation3 + $0xd4] ss:$8 sps:$4 sm:$0xff]  }
  0x53   :  { %781 = vmatpush1.bf16.msra.mxu1 %v2341_v5  ;;  %v2408_v5 = vld [vmem:[#allocation3 + $0x100] ss:$8 sps:$4 sm:$0xff]  }
  0x54   :  { %720 = vmatmul.mubr.bf16.vlgmr.msra.gmra.mrb[0].mxu0 %v2867_v63  ;;  %1134 = vmatprep.subr.bf16.mxu1 %v2383_v6  ;;  %v2416_v6 = vld [vmem:[#allocation3 + $0x114] ss:$8 sps:$4 sm:$0xff]  }
  0x55   :  { %729 = vmatprep.mubr.bf16.mxu0 %v2872_v0  ;;  %814 = vmatpush1.bf16.msra.mxu0 %v2345_v3  ;;  %v2402_v3 = vld [vmem:[%s3115_s1 + $0x2e0] ss:$24 sps:$4 sm:$0xff]  }
  0x56   :  { %815 = vmatprep.subr.bf16.mxu0 %v2350_v4  ;;  %783 = vmatmul.mubr.bf16.vlgmr.msra.gmra.mrb[0].mxu1 %v2867_v63  ;;  %v2410_v4 = vld [vmem:[#allocation3 + $0x104] ss:$8 sps:$4 sm:$0xff]  }
  0x57   :  { %792 = vmatprep.mubr.bf16.mxu1 %v2872_v0  ;;  %1135 = vmatpush1.bf16.msra.mxu1 %v2381_v12  ;;  %v2428_v12 = vld [vmem:[#allocation3 + $0x134] ss:$8 sps:$4 sm:$0xff]  }
  0x58   :  { %1136 = vmatprep.subr.bf16.mxu1 %v2389_v13  ;;  %v2426_v13 = vld [vmem:[#allocation3 + $0x130] ss:$8 sps:$4 sm:$0xff]  }
  0x59   :  { %816 = vmatpush1.bf16.msra.mxu0 %v2348_v7  ;;  %v2414_v7 = vld [vmem:[#allocation3 + $0x110] ss:$8 sps:$4 sm:$0xff]  }
  0x5a   :  { %817 = vmatprep.subr.bf16.mxu0 %v2353_v9  ;;  %v2422_v9 = vld [vmem:[#allocation3 + $0x124] ss:$8 sps:$4 sm:$0xff]  }
  0x5b   :  { %1137 = vmatpush1.bf16.msra.mxu1 %v2387_v16  ;;  %v2446_v16 = vld [vmem:[#allocation3 + $0x164] ss:$8 sps:$4 sm:$0xff]  }
  0x5c   :  { %730 = vmatmul.mubr.bf16.gmra.mrb[4].mxu0 %v2897_v8  ;;  %1138 = vmatprep.subr.bf16.mxu1 %v2395_v17  ;;  %v2467_v17 = vld [vmem:[#allocation3 + $0xe4] ss:$8 sps:$4 sm:$0xff]  }
  0x5d   :  { %739 = vmatprep.mubr.bf16.mxu0 %v2905_v10  ;;  %818 = vmatpush1.bf16.msra.mxu0 %v2351_v11  ;;  %v2420_v11 = vld [vmem:[#allocation3 + $0x120] ss:$8 sps:$4 sm:$0xff]  }
  0x5e   :  { %819 = vmatprep.subr.bf16.mxu0 %v2356_v14  ;;  %793 = vmatmul.mubr.bf16.gmra.mrb[4].mxu1 %v2897_v8  ;;  %v2434_v14 = vld [vmem:[#allocation3 + $0x144] ss:$8 sps:$4 sm:$0xff]  }
  0x5f   :  { %802 = vmatprep.mubr.bf16.mxu1 %v2905_v10  ;;  %1139 = vmatpush1.bf16.msra.mxu1 %v2393_v21  ;;  %v2471_v21 = vld [vmem:[#allocation3 + $0xf0] ss:$8 sps:$4 sm:$0xff]  }
  0x60   :  { %1140 = vmatprep.subr.bf16.mxu1 %v2401_v22  ;;  %v2450_v22 = vld [vmem:[#allocation3 + $0x170] ss:$8 sps:$4 sm:$0xff]  }
  0x61   :  { %820 = vmatpush1.bf16.msra.mxu0 %v2354_v15  ;;  %v2440_v15 = vld [vmem:[#allocation3 + $0x154] ss:$8 sps:$4 sm:$0xff]  }
  0x62   :  { %821 = vmatprep.subr.bf16.mxu0 %v2359_v18  ;;  %v2465_v18 = vld [vmem:[#allocation3 + $0xe0] ss:$8 sps:$4 sm:$0xff]  }
  0x63   :  { %1141 = vmatpush1.bf16.msra.mxu1 %v2399_v25  ;;  %v2462_v25 = vld [vmem:[#allocation3 + $0x190] ss:$8 sps:$4 sm:$0xff]  }
  0x64   :  { %740 = vmatmul.mubr.bf16.gmra.mrb[8].mxu0 %v2926_v19  ;;  %1142 = vmatprep.subr.bf16.mxu1 %v2407_v26  ;;  %v2470_v26 = vld [vmem:[#allocation3 + $0x1a4] ss:$8 sps:$4 sm:$0xff]  }
  0x65   :  { %845 = vmatprep.mubr.bf16.mxu0 %v2791_v39  ;;  %822 = vmatpush1.bf16.msra.mxu0 %v2357_v20  ;;  %v2374_v39 = vld [vmem:[%s3115_s1 + $0x1c4] ss:$24 sps:$4 sm:$0xff]  }
  0x66   :  { %823 = vmatprep.subr.bf16.mxu0 %v2362_v23  ;;  %803 = vmatmul.mubr.bf16.gmra.mrb[8].mxu1 %v2926_v19  ;;  %v2452_v20 = vld [vmem:[#allocation3 + $0x174] ss:$8 sps:$4 sm:$0xff]   ;;  %v2458_v23 = vld [vmem:[#allocation3 + $0x184] ss:$8 sps:$4 sm:$0xff]  }
  0x67   :  { %1143 = vmatpush1.bf16.msra.mxu1 %v2405_v29  ;;  %v2474_v29 = vld [vmem:[#allocation3 + $0x1b0] ss:$8 sps:$4 sm:$0xff]  }
  0x68   :  { %1144 = vmatprep.subr.bf16.mxu1 %v2413_v30  ;;  %v2479_v30 = vld [vmem:[#allocation3 + $0x1c4] ss:$8 sps:$4 sm:$0xff]  }
  0x69   :  { %824 = vmatpush1.bf16.msra.mxu0 %v2360_v24  ;;  %v2464_v24 = vld [vmem:[#allocation3 + $0x194] ss:$8 sps:$4 sm:$0xff]  }
  0x6a   :  { %825 = vmatprep.subr.bf16.mxu0 %v2365_v27  ;;  %v2468_v27 = vld [vmem:[#allocation3 + $0x1a0] ss:$8 sps:$4 sm:$0xff]  }
  0x6b   :  { %1145 = vmatpush1.bf16.msra.mxu1 %v2411_v33  ;;  %v2480_v33 = vld [vmem:[#allocation3 + $0x1d0] ss:$8 sps:$4 sm:$0xff]  }
  0x6c   :  { %1146 = vmatprep.subr.bf16.mxu1 %v2419_v34  ;;  %v2485_v34 = vld [vmem:[#allocation3 + $0x1e4] ss:$8 sps:$4 sm:$0xff]  }
  0x6d   :  { %826 = vmatpush1.bf16.msra.mxu0 %v2363_v28  ;;  %v2476_v28 = vld [vmem:[#allocation3 + $0x1b4] ss:$8 sps:$4 sm:$0xff]  }
  0x6e   :  { %827 = vmatprep.subr.bf16.mxu0 %v2368_v31  ;;  %v2477_v31 = vld [vmem:[#allocation3 + $0x1c0] ss:$8 sps:$4 sm:$0xff]  }
  0x6f   :  { %1147 = vmatpush1.bf16.msra.mxu1 %v2417_v37  ;;  %v2488_v37 = vld [vmem:[#allocation3 + $0x1f4] ss:$8 sps:$4 sm:$0xff]  }
  0x70   :  { %1148 = vmatprep.subr.bf16.mxu1 %v2425_v38  ;;  %v2486_v38 = vld [vmem:[#allocation3 + $0x1f0] ss:$8 sps:$4 sm:$0xff]  }
  0x71   :  { %828 = vmatpush1.bf16.msra.mxu0 %v2366_v32  ;;  %v2482_v32 = vld [vmem:[#allocation3 + $0x1d4] ss:$8 sps:$4 sm:$0xff]  }
  0x72   :  { %829 = vmatprep.subr.bf16.mxu0 %v2371_v35  ;;  %v2491_v35 = vld [vmem:[#allocation3 + $0x204] ss:$8 sps:$4 sm:$0xff]  }
  0x73   :  { %1149 = vmatpush1.bf16.msra.mxu1 %v2423_v41 }
  0x74   :  { %1150 = vmatprep.subr.bf16.mxu1 %v2431_v43 }
  0x75   :  { %830 = vmatpush1.bf16.msra.mxu0 %v2369_v36  ;;  %v2483_v36 = vld [vmem:[#allocation3 + $0x1e0] ss:$8 sps:$4 sm:$0xff]  }
  0x76   :  { %831 = vmatprep.subr.bf16.mxu0 %v2374_v39  ;;  %v147_v39 = vlaneseq }
  0x77   :  { %1151 = vmatpush1.bf16.msra.mxu1 %v2429_v44 }
  0x78   :  { %1152 = vmatprep.subr.bf16.mxu1 %v2437_v46 }
  0x79   :  { %832 = vmatpush1.bf16.msra.mxu0 %v2372_v40  ;;  %v3007_v40 = vshrl.u32 %v147_v39, 7 }
  0x7a   :  { %833 = vmatprep.subr.bf16.mxu0 %v2377_v42  ;;  %v3015_v42 = vld [vmem:[%s3116_s2] sm:$0x3f] }
  0x7b   :  { %1153 = vmatpush1.bf16.msra.mxu1 %v2435_v48  ;;  %v3010_v41 = vsub.s32 0, %v3007_v40  ;;  %v3018_v43 = vsub.s32 1, %v3007_v40 }
  0x7c   :  { %1154 = vmatprep.subr.bf16.mxu1 %v2443_v50  ;;  %v161_v50 = vsub.s32 3, %v3007_v40 }
  0x7d   :  { %834 = vmatpush1.bf16.msra.mxu0 %v2375_v45  ;;  %v3022_v44 = vrot.slane %v3015_v42, %v3010_v41  ;;  %v3026_v45 = vrot.slane %v3015_v42, %v3018_v43 }
  0x7e   :  { %835 = vmatprep.subr.bf16.mxu0 %v2380_v47  ;;  %v157_v47 = vsub.s32 2, %v3007_v40 }
  0x7f   :  { %1155 = vmatpush1.bf16.msra.mxu1 %v2441_v52 }
  0x80   :  { %1156 = vmatprep.subr.bf16.mxu1 %v2449_v54 }
  0x81   :  { %836 = vmatpush1.bf16.msra.mxu0 %v2378_v49 }
  0x82   :  { %837 = vmatprep.subr.bf16.mxu0 %v2386_v51 }
  0x83   :  { %1157 = vmatpush1.bf16.msra.mxu1 %v2447_v56  ;;  %v3035_v56 = vrot.slane %v3015_v42, %v157_v47  ;;  %v2500_v47 = vld [vmem:[#allocation3 + $0x234] ss:$8 sps:$4 sm:$0xff]  }
  0x84   :  { %1158 = vmatprep.subr.bf16.mxu1 %v2455_v58 }
  0x85   :  { %838 = vmatpush1.bf16.msra.mxu0 %v2384_v53 }
  0x86   :  { %839 = vmatprep.subr.bf16.mxu0 %v2392_v55 }
  0x87   :  { %1159 = vmatpush1.bf16.msra.mxu1 %v2453_v60 }
  0x88   :  { %1160 = vmatprep.subr.bf16.mxu1 %v2461_v62 }
  0x89   :  { %840 = vmatpush1.bf16.msra.mxu0 %v2390_v57 }
  0x8a   :  { %841 = vmatprep.subr.bf16.mxu0 %v2398_v59  ;;  %v3038_v59 = vrot.slane %v3015_v42, %v161_v50 }
  0x8b   :  { %1161 = vmatpush1.bf16.msra.mxu1 %v2459_v2 }
  0x8c   :  { %1162 = vmatprep.subr.bf16.mxu1 %v2467_v17 }
  0x8d   :  { %842 = vmatpush1.bf16.msra.mxu0 %v2396_v61 }
  0x8e   :  { %843 = vmatprep.subr.bf16.mxu0 %v2404_v1 }
  0x8f   :  { %1163 = vmatpush1.bf16.msra.mxu1 %v2465_v18 }
  0x91   :  { %844 = vmatpush1.bf16.msra.mxu0 %v2402_v3 }
  0x92   :  { %1402 = vmatprep.subr.bf16.mxu0 %v2410_v4 }
  0x94   :  { %846 = vmatmul.mubr.bf16.vlgmr.msra.gmra.mrb[12].mxu0 %v2867_v63  ;;  %v2432_v63 = vld [vmem:[#allocation3 + $0x140] ss:$8 sps:$4 sm:$0xff]  }
  0x95   :  { %1403 = vmatpush1.bf16.msra.mxu0 %v2408_v5  ;;  %855 = vmatprep.mubr.bf16.mxu0 %v2872_v0  ;;  %v2438_v0 = vld [vmem:[#allocation3 + $0x150] ss:$8 sps:$4 sm:$0xff]  }
  0x96   :  { %1404 = vmatprep.subr.bf16.mxu0 %v2416_v6  ;;  %v2489_v6 = vld [vmem:[#allocation3 + $0x200] ss:$8 sps:$4 sm:$0xff]  }
  0x99   :  { %1405 = vmatpush1.bf16.msra.mxu0 %v2414_v7 }
  0x9a   :  { %1406 = vmatprep.subr.bf16.mxu0 %v2422_v9 }
  0x9c   :  { %856 = vmatmul.mubr.bf16.gmra.mrb[16].mxu0 %v2897_v8  ;;  %v2444_v8 = vld [vmem:[#allocation3 + $0x160] ss:$8 sps:$4 sm:$0xff]  }
  0x9d   :  { %1407 = vmatpush1.bf16.msra.mxu0 %v2420_v11  ;;  %865 = vmatprep.mubr.bf16.mxu0 %v2905_v10  ;;  %v2473_v10 = vld [vmem:[#allocation3 + $0xf4] ss:$8 sps:$4 sm:$0xff]  }
  0x9e   :  { %1408 = vmatprep.subr.bf16.mxu0 %v2428_v12  ;;  %1164 = vmatprep.subr.bf16.mxu1 %v2473_v10 }
  0x9f   :  { %1165 = vmatpush1.bf16.msra.mxu1 %v2471_v21 }
  0xa0   :  { %1670 = vmatprep.subr.bf16.mxu1 %v2491_v35 }
  0xa1   :  { %1409 = vmatpush1.bf16.msra.mxu0 %v2426_v13  ;;  %v2494_v13 = vld [vmem:[#allocation3 + $0x214] ss:$8 sps:$4 sm:$0xff]  }
  0xa2   :  { %1410 = vmatprep.subr.bf16.mxu0 %v2434_v14 }
  0xa4   :  { %866 = vmatmul.mubr.bf16.gmra.mrb[20].mxu0 %v2926_v19  ;;  %v2456_v19 = vld [vmem:[#allocation3 + $0x180] ss:$8 sps:$4 sm:$0xff]  }
  0xa5   :  { %1411 = vmatpush1.bf16.msra.mxu0 %v2432_v63 }
  0xa6   :  { %1412 = vmatprep.subr.bf16.mxu0 %v2440_v15 }
  0xa9   :  { %1413 = vmatpush1.bf16.msra.mxu0 %v2438_v0 }
  0xaa   :  { %1414 = vmatprep.subr.bf16.mxu0 %v2446_v16 }
  0xad   :  { %1415 = vmatpush1.bf16.msra.mxu0 %v2444_v8 }
  0xae   :  { %1416 = vmatprep.subr.bf16.mxu0 %v2452_v20 }
  0xb1   :  { %1417 = vmatpush1.bf16.msra.mxu0 %v2450_v22  ;;  %v2492_v22 = vld [vmem:[#allocation3 + $0x210] ss:$8 sps:$4 sm:$0xff]  }
  0xb2   :  { %1418 = vmatprep.subr.bf16.mxu0 %v2458_v23 }
  0xb5   :  { %1419 = vmatpush1.bf16.msra.mxu0 %v2456_v19 }
  0xb6   :  { %1420 = vmatprep.subr.bf16.mxu0 %v2464_v24 }
  0xb9   :  { %1421 = vmatpush1.bf16.msra.mxu0 %v2462_v25  ;;  %v2497_v25 = vld [vmem:[#allocation3 + $0x224] ss:$8 sps:$4 sm:$0xff]  }
  0xba   :  { %1422 = vmatprep.subr.bf16.mxu0 %v2470_v26 }
  0xbd   :  { %1423 = vmatpush1.bf16.msra.mxu0 %v2468_v27 }
  0xbe   :  { %1424 = vmatprep.subr.bf16.mxu0 %v2476_v28 }
  0xc1   :  { %1425 = vmatpush1.bf16.msra.mxu0 %v2474_v29 }
  0xc2   :  { %1426 = vmatprep.subr.bf16.mxu0 %v2479_v30 }
  0xc5   :  { %1427 = vmatpush1.bf16.msra.mxu0 %v2477_v31 }
  0xc6   :  { %1428 = vmatprep.subr.bf16.mxu0 %v2482_v32 }
  0xc9   :  { %1429 = vmatpush1.bf16.msra.mxu0 %v2480_v33 }
  0xca   :  { %1430 = vmatprep.subr.bf16.mxu0 %v2485_v34 }
  0xcd   :  { %1431 = vmatpush1.bf16.msra.mxu0 %v2483_v36  ;;  %v2495_v36 = vld [vmem:[#allocation3 + $0x220] ss:$8 sps:$4 sm:$0xff]  }
  0xce   :  { %1432 = vmatprep.subr.bf16.mxu0 %v2488_v37 }
  0xd1   :  { %1433 = vmatpush1.bf16.msra.mxu0 %v2486_v38 }
 0x127   :  { %v721_v46 = vpop.f32.mrb[0].mxu0 }
 0x128   :  { %v722_v48 = vadd.f32 %v721_v46, %v3022_v44  ;;  %v723_v49 = vpop.f32.mrb[1].mxu0 }
 0x129   :  { %v724_v51 = vadd.f32 %v723_v49, %v3026_v45  ;;  %v725_v52 = vpop.f32.mrb[2].mxu0  ;;  %v784_v1 = vpop.f32.mrb[0].mxu1 }
 0x12a   :  { %v726_v53 = vadd.f32 %v725_v52, %v3022_v44  ;;  %v727_v54 = vpop.f32.mrb[3].mxu0  ;;  %v876_v57 = vmax.f32 %v722_v48, 0.0  ;;  %v785_v4 = vadd.f32 %v784_v1, %v3035_v56  ;;  %v786_v5 = vpop.f32.mrb[1].mxu1 }
 0x12b   :  { %v728_v55 = vadd.f32 %v727_v54, %v3026_v45  ;;  %v877_v60 = vmax.f32 %v724_v51, 0.0  ;;  %v787_v11 = vadd.f32 %v786_v5, %v3038_v59  ;;  %v788_v12 = vpop.f32.mrb[2].mxu1 }
 0x12c   :  { %v882_v58 = vmax.f32 %v726_v53, 0.0  ;;  %v878_v15 = vmax.f32 %v785_v4, 0.0  ;;  %v789_v0 = vadd.f32 %v788_v12, %v3035_v56  ;;  %v790_v16 = vpop.f32.mrb[3].mxu1 }
 0x12d   :  { %v883_v61 = vmax.f32 %v728_v55, 0.0  ;;  %v879_v8 = vmax.f32 %v787_v11, 0.0  ;;  %v791_v20 = vadd.f32 %v790_v16, %v3038_v59 }
 0x12e   :  { %v912_v62 = vpack.c.bf16 %v882_v58, %v876_v57  ;;  %v884_v21 = vmax.f32 %v789_v0, 0.0 }
 0x12f   :  { %v913_v2 = vpack.c.bf16 %v883_v61, %v877_v60  ;;  %v731_v3 = vpop.f32.mrb[4].mxu0  ;;  %v885_v24 = vmax.f32 %v791_v20, 0.0  ;;  %v2498_v61 = vld [vmem:[#allocation3 + $0x230] ss:$8 sps:$4 sm:$0xff]  }
 0x130   :  { %v732_v7 = vadd.f32 %v731_v3, %v3022_v44  ;;  %v733_v9 = vpop.f32.mrb[5].mxu0  ;;  %v914_v28 = vpack.c.bf16 %v884_v21, %v878_v15  ;;  %v2503_v3 = vld [vmem:[#allocation3 + $0x244] ss:$8 sps:$4 sm:$0xff]   ;;  %v2506_v15 = vld [vmem:[#allocation3 + $0x254] ss:$8 sps:$4 sm:$0xff]  }
 0x131   :  { %v734_v14 = vadd.f32 %v733_v9, %v3026_v45  ;;  %v735_v63 = vpop.f32.mrb[6].mxu0  ;;  %1166 = vmatprep.mubr.bf16.mxu1 %v913_v2  ;;  %v915_v30 = vpack.c.bf16 %v885_v24, %v879_v8  ;;  %v794_v31 = vpop.f32.mrb[4].mxu1  ;;  %v2507_v24 = vld [vmem:[#allocation3 + $0x260] ss:$8 sps:$4 sm:$0xff]  }
 0x132   :  { %v736_v17 = vadd.f32 %v735_v63, %v3022_v44  ;;  %v737_v18 = vpop.f32.mrb[7].mxu0  ;;  %1167 = vmatmul.mubr.bf16.vlgmr.msra.gmra.mrb[12].mxu1 %v912_v62  ;;  %v888_v23 = vmax.f32 %v732_v7, 0.0  ;;  %v795_v34 = vadd.f32 %v794_v31, %v3035_v56  ;;  %v796_v35 = vpop.f32.mrb[5].mxu1  ;;  %v2524_v31 = vld [vmem:[#allocation3 + $0x2b4] ss:$8 sps:$4 sm:$0xff]  }
 0x133   :  { %v738_v10 = vadd.f32 %v737_v18, %v3026_v45  ;;  %1671 = vmatpush1.bf16.msra.mxu1 %v2489_v6  ;;  %v889_v26 = vmax.f32 %v734_v14, 0.0  ;;  %v797_v39 = vadd.f32 %v796_v35, %v3038_v59  ;;  %v798_v46 = vpop.f32.mrb[6].mxu1  ;;  %1434 = vmatprep.mubr.bf16.mxu0 %v915_v30  ;;  %v2519_v30 = vld [vmem:[#allocation3 + $0x2a0] ss:$8 sps:$4 sm:$0xff]   ;;  %v2530_v35 = vld [vmem:[#allocation3 + $0x2d4] ss:$8 sps:$4 sm:$0xff]  }
 0x134   :  { %v894_v19 = vmax.f32 %v736_v17, 0.0  ;;  %1672 = vmatprep.subr.bf16.mxu1 %v2494_v13  ;;  %v890_v50 = vmax.f32 %v795_v34, 0.0  ;;  %v799_v51 = vadd.f32 %v798_v46, %v3035_v56  ;;  %v800_v52 = vpop.f32.mrb[7].mxu1  ;;  %1435 = vmatmul.mubr.bf16.vlgmr.msra.gmra.mrb[24].mxu0 %v914_v28  ;;  %v2516_v28 = vld [vmem:[#allocation3 + $0x290] ss:$8 sps:$4 sm:$0xff]  }
 0x135   :  { %v895_v27 = vmax.f32 %v738_v10, 0.0  ;;  %v891_v55 = vmax.f32 %v797_v39, 0.0  ;;  %v801_v57 = vadd.f32 %v800_v52, %v3038_v59  ;;  %v2504_v10 = vld [vmem:[#allocation3 + $0x250] ss:$8 sps:$4 sm:$0xff]   ;;  %v2525_v34 = vld [vmem:[#allocation3 + $0x2c0] ss:$8 sps:$4 sm:$0xff]  }
 0x136   :  { %v918_v29 = vpack.c.bf16 %v894_v19, %v888_v23  ;;  %v896_v60 = vmax.f32 %v799_v51, 0.0  ;;  %v2533_v39 = vld [vmem:[#allocation3 + $0x2e4] ss:$8 sps:$4 sm:$0xff]  }
 0x137   :  { %v919_v32 = vpack.c.bf16 %v895_v27, %v889_v26  ;;  %v741_v33 = vpop.f32.mrb[8].mxu0  ;;  %1673 = vmatpush1.bf16.msra.mxu1 %v2492_v22  ;;  %v897_v2 = vmax.f32 %v801_v57, 0.0  ;;  %v2509_v22 = vld [vmem:[#allocation3 + $0x264] ss:$8 sps:$4 sm:$0xff]   ;;  %v2518_v27 = vld [vmem:[#allocation3 + $0x294] ss:$8 sps:$4 sm:$0xff]  }
 0x138   :  { %v742_v37 = vadd.f32 %v741_v33, %v3022_v44  ;;  %v743_v38 = vpop.f32.mrb[9].mxu0  ;;  %1674 = vmatprep.subr.bf16.mxu1 %v2497_v25  ;;  %v920_v6 = vpack.c.bf16 %v896_v60, %v890_v50  ;;  %v2512_v25 = vld [vmem:[#allocation3 + $0x274] ss:$8 sps:$4 sm:$0xff]   ;;  %v2515_v26 = vld [vmem:[#allocation3 + $0x284] ss:$8 sps:$4 sm:$0xff]  }
 0x139   :  { %v744_v48 = vadd.f32 %v743_v38, %v3026_v45  ;;  %v745_v49 = vpop.f32.mrb[10].mxu0  ;;  %1176 = vmatprep.mubr.bf16.mxu1 %v919_v32  ;;  %v804_v9 = vpop.f32.mrb[8].mxu1  ;;  %v2522_v32 = vld [vmem:[#allocation3 + $0x2b0] ss:$8 sps:$4 sm:$0xff]   ;;  %v2527_v33 = vld [vmem:[#allocation3 + $0x2c4] ss:$8 sps:$4 sm:$0xff]  }
 0x13a   :  { %v746_v53 = vadd.f32 %v745_v49, %v3022_v44  ;;  %v747_v54 = vpop.f32.mrb[11].mxu0  ;;  %1177 = vmatmul.mubr.bf16.gmra.mrb[16].mxu1 %v918_v29  ;;  %v900_v62 = vmax.f32 %v742_v37, 0.0  ;;  %v921_v44 = vpack.c.bf16 %v897_v2, %v891_v55  ;;  %v805_v12 = vadd.f32 %v804_v9, %v3035_v56  ;;  %v806_v13 = vpop.f32.mrb[9].mxu1  ;;  %v2521_v29 = vld [vmem:[#allocation3 + $0x2a4] ss:$8 sps:$4 sm:$0xff]  }
 0x13b   :  { %v748_v58 = vadd.f32 %v747_v54, %v3026_v45  ;;  %1675 = vmatpush1.bf16.msra.mxu1 %v2495_v36  ;;  %v901_v4 = vmax.f32 %v744_v48, 0.0  ;;  %v2501_v45 = vld [vmem:[#allocation3 + $0x240] ss:$8 sps:$4 sm:$0xff]   ;;  %v807_v14 = vadd.f32 %v806_v13, %v3038_v59  ;;  %v808_v63 = vpop.f32.mrb[10].mxu1  ;;  %v165_v36 = vsub.s32 4, %v3007_v40 }
 0x13c   :  { %v906_v1 = vmax.f32 %v746_v53, 0.0  ;;  %1676 = vmatprep.subr.bf16.mxu1 %v2500_v47  ;;  %1444 = vmatprep.mubr.bf16.mxu0 %v921_v44  ;;  %v902_v0 = vmax.f32 %v805_v12, 0.0  ;;  %v809_v16 = vadd.f32 %v808_v63, %v3035_v56  ;;  %v810_v17 = vpop.f32.mrb[11].mxu1  ;;  %v2510_v56 = vld [vmem:[#allocation3 + $0x270] ss:$8 sps:$4 sm:$0xff]   ;;  %v169_v37 = vsub.s32 5, %v3007_v40 }
 0x13d   :  { %v907_v5 = vmax.f32 %v748_v58, 0.0  ;;  %1445 = vmatmul.mubr.bf16.gmra.mrb[28].mxu0 %v920_v6  ;;  %v903_v18 = vmax.f32 %v807_v14, 0.0  ;;  %v811_v8 = vadd.f32 %v810_v17, %v3038_v59  ;;  %v2513_v59 = vld [vmem:[#allocation3 + $0x280] ss:$8 sps:$4 sm:$0xff]   ;;  %v2528_v38 = vld [vmem:[#allocation3 + $0x2d0] ss:$8 sps:$4 sm:$0xff]   ;;  %v166_v46 = vrot.slane %v3015_v42, %v165_v36 }
 0x13e   :  { %v924_v7 = vpack.c.bf16 %v906_v1, %v900_v62  ;;  %v908_v20 = vmax.f32 %v809_v16, 0.0  ;;  %v170_v47 = vrot.slane %v3015_v42, %v169_v37  ;;  %v2531_v48 = vld [vmem:[#allocation3 + $0x2e0] ss:$8 sps:$4 sm:$0xff]   ;;  %v2536_v50 = vld [vmem:[#allocation3 + $0x2f4] ss:$8 sps:$4 sm:$0xff]  }
 0x13f   :  { %v925_v11 = vpack.c.bf16 %v907_v5, %v901_v4  ;;  %1677 = vmatpush1.bf16.msra.mxu1 %v2498_v61  ;;  %v909_v21 = vmax.f32 %v811_v8, 0.0  ;;  %v2534_v58 = vld [vmem:[#allocation3 + $0x2f0] ss:$8 sps:$4 sm:$0xff]  }
 0x140   :  { %1678 = vmatprep.subr.bf16.mxu1 %v2503_v3  ;;  %v926_v23 = vpack.c.bf16 %v908_v20, %v902_v0 }
 0x141   :  { %1186 = vmatprep.mubr.bf16.mxu1 %v925_v11  ;;  %v927_v19 = vpack.c.bf16 %v909_v21, %v903_v18 }
 0x142   :  { %1187 = vmatmul.mubr.bf16.gmra.mrb[20].mxu1 %v924_v7 }
 0x143   :  { %1679 = vmatpush1.bf16.msra.mxu1 %v2501_v45  ;;  %1454 = vmatprep.mubr.bf16.mxu0 %v927_v19 }
 0x144   :  { %1680 = vmatprep.subr.bf16.mxu1 %v2506_v15 }
 0x145   :  { %1455 = vmatmul.mubr.bf16.gmra.mrb[32].mxu0 %v926_v23 }
 0x147   :  { %1681 = vmatpush1.bf16.msra.mxu1 %v2504_v10 }
 0x148   :  { %1682 = vmatprep.subr.bf16.mxu1 %v2509_v22 }
 0x14b   :  { %1683 = vmatpush1.bf16.msra.mxu1 %v2507_v24 }
 0x14c   :  { %1684 = vmatprep.subr.bf16.mxu1 %v2512_v25 }
 0x14f   :  { %1685 = vmatpush1.bf16.msra.mxu1 %v2510_v56 }
 0x150   :  { %1686 = vmatprep.subr.bf16.mxu1 %v2515_v26  ;;  %v962_v26 = vld [vmem:[%s3118_s4] sm:$0x3] }
 0x153   :  { %1687 = vmatpush1.bf16.msra.mxu1 %v2513_v59  ;;  %v967_v59 = vrot.slane %v962_v26, %v3010_v41 }
 0x154   :  { %1688 = vmatprep.subr.bf16.mxu1 %v2518_v27 }
 0x157   :  { %1689 = vmatpush1.bf16.msra.mxu1 %v2516_v28  ;;  %v971_v28 = vrot.slane %v962_v26, %v3018_v43 }
 0x158   :  { %1690 = vmatprep.subr.bf16.mxu1 %v2521_v29 }
 0x15b   :  { %1691 = vmatpush1.bf16.msra.mxu1 %v2519_v30  ;;  %v1230_v30 = vld [vmem:[%s3118_s4 + $0x2] sm:$0x3] }
 0x15c   :  { %1692 = vmatprep.subr.bf16.mxu1 %v2524_v31  ;;  %v1235_v37 = vrot.slane %v1230_v30, %v3010_v41 }
 0x15f   :  { %1693 = vmatpush1.bf16.msra.mxu1 %v2522_v32 }
 0x160   :  { %1694 = vmatprep.subr.bf16.mxu1 %v2527_v33 }
 0x163   :  { %1695 = vmatpush1.bf16.msra.mxu1 %v2525_v34 }
 0x164   :  { %1696 = vmatprep.subr.bf16.mxu1 %v2530_v35 }
 0x167   :  { %1697 = vmatpush1.bf16.msra.mxu1 %v2528_v38  ;;  %v847_v49 = vpop.f32.mrb[12].mxu0 }
 0x168   :  { %1698 = vmatprep.subr.bf16.mxu1 %v2533_v39  ;;  %v848_v51 = vadd.f32 %v847_v49, %v166_v46  ;;  %v849_v52 = vpop.f32.mrb[13].mxu0  ;;  %v1239_v39 = vrot.slane %v1230_v30, %v3018_v43 }
 0x169   :  { %v850_v53 = vadd.f32 %v849_v52, %v170_v47  ;;  %v851_v54 = vpop.f32.mrb[14].mxu0 }
 0x16a   :  { %v880_v55 = vmax.f32 %v848_v51, 0.0  ;;  %v852_v57 = vadd.f32 %v851_v54, %v166_v46  ;;  %v853_v40 = vpop.f32.mrb[15].mxu0 }
 0x16b   :  { %1699 = vmatpush1.bf16.msra.mxu1 %v2531_v48  ;;  %v881_v60 = vmax.f32 %v850_v53, 0.0  ;;  %v854_v61 = vadd.f32 %v853_v40, %v170_v47 }
 0x16c   :  { %1700 = vmatprep.subr.bf16.mxu1 %v2536_v50  ;;  %v886_v62 = vmax.f32 %v852_v57, 0.0 }
 0x16d   :  { %v887_v1 = vmax.f32 %v854_v61, 0.0 }
 0x16e   :  { %v916_v42 = vpack.c.bf16 %v886_v62, %v880_v55 }
 0x16f   :  { %1701 = vmatpush1.bf16.msra.mxu1 %v2534_v58  ;;  %v917_v2 = vpack.c.bf16 %v887_v1, %v881_v60  ;;  %v857_v3 = vpop.f32.mrb[16].mxu0 }
 0x170   :  { %v858_v4 = vadd.f32 %v857_v3, %v166_v46  ;;  %v859_v5 = vpop.f32.mrb[17].mxu0 }
 0x171   :  { %1702 = vmatprep.mubr.bf16.mxu1 %v917_v2  ;;  %v860_v6 = vadd.f32 %v859_v5, %v170_v47  ;;  %v861_v7 = vpop.f32.mrb[18].mxu0 }
 0x172   :  { %1703 = vmatmul.mubr.bf16.vlgmr.msra.gmra.mrb[24].mxu1 %v916_v42  ;;  %v892_v44 = vmax.f32 %v858_v4, 0.0  ;;  %v862_v9 = vadd.f32 %v861_v7, %v166_v46  ;;  %v863_v11 = vpop.f32.mrb[19].mxu0 }
 0x173   :  { %v893_v12 = vmax.f32 %v860_v6, 0.0  ;;  %v864_v13 = vadd.f32 %v863_v11, %v170_v47 }
 0x174   :  { %v898_v45 = vmax.f32 %v862_v9, 0.0 }
 0x175   :  { %v899_v14 = vmax.f32 %v864_v13, 0.0 }
 0x176   :  { %v922_v63 = vpack.c.bf16 %v898_v45, %v892_v44 }
 0x177   :  { %v867_v15 = vpop.f32.mrb[20].mxu0  ;;  %v923_v0 = vpack.c.bf16 %v899_v14, %v893_v12 }
 0x178   :  { %v868_v16 = vadd.f32 %v867_v15, %v166_v46  ;;  %v869_v17 = vpop.f32.mrb[21].mxu0 }
 0x179   :  { %v870_v18 = vadd.f32 %v869_v17, %v170_v47  ;;  %v871_v8 = vpop.f32.mrb[22].mxu0  ;;  %1712 = vmatprep.mubr.bf16.mxu1 %v923_v0 }
 0x17a   :  { %v904_v20 = vmax.f32 %v868_v16, 0.0  ;;  %v872_v10 = vadd.f32 %v871_v8, %v166_v46  ;;  %v873_v21 = vpop.f32.mrb[23].mxu0  ;;  %1713 = vmatmul.mubr.bf16.gmra.mrb[28].mxu1 %v922_v63 }
 0x17b   :  { %v905_v22 = vmax.f32 %v870_v18, 0.0  ;;  %v874_v23 = vadd.f32 %v873_v21, %v170_v47 }
 0x17c   :  { %v910_v19 = vmax.f32 %v872_v10, 0.0 }
 0x17d   :  { %v911_v24 = vmax.f32 %v874_v23, 0.0 }
 0x17e   :  { %v928_v25 = vpack.c.bf16 %v910_v19, %v904_v20 }
 0x17f   :  { %v929_v56 = vpack.c.bf16 %v911_v24, %v905_v22 }
 0x181   :  { %1722 = vmatprep.mubr.bf16.mxu1 %v929_v56 }
 0x182   :  { %1723 = vmatmul.mubr.bf16.gmra.mrb[32].mxu1 %v928_v25 }
 0x205   :  { %v1168_v27 = vpop.f32.mrb[12].mxu1 }
 0x206   :  { %v1170_v29 = vpop.f32.mrb[13].mxu1  ;;  %v1169_v32 = vadd.f32 %v1168_v27, %v967_v59 }
 0x207   :  { %v1172_v31 = vpop.f32.mrb[14].mxu1  ;;  %v1171_v35 = vadd.f32 %v1170_v29, %v971_v28  ;;  %v1436_v47 = vpop.f32.mrb[24].mxu0 }
 0x208   :  { %v1173_v33 = vadd.f32 %v1172_v31, %v967_v59  ;;  %v1174_v34 = vpop.f32.mrb[15].mxu1  ;;  %v1437_v49 = vadd.f32 %v1436_v47, %v1235_v37  ;;  %v1438_v50 = vpop.f32.mrb[25].mxu0 }
 0x209   :  { %v1175_v36 = vadd.f32 %v1174_v34, %v971_v28  ;;  %v1439_v52 = vadd.f32 %v1438_v50, %v1239_v39  ;;  %v1440_v53 = vpop.f32.mrb[26].mxu0 }
 0x20a   :  { %v1739_v38 = vpack.c.bf16 %v1173_v33, %v1169_v32  ;;  %v1441_v55 = vadd.f32 %v1440_v53, %v1235_v37  ;;  %v1442_v57 = vpop.f32.mrb[27].mxu0 }
 0x20b   :  { %v1740_v46 = vpack.c.bf16 %v1175_v36, %v1171_v35  ;;  %v1443_v61 = vadd.f32 %v1442_v57, %v1239_v39 }
 0x20c   :  { %v1733_v42 = vpack.c.bf16 %v1441_v55, %v1437_v49 }
 0x20d   :  { %v1178_v48 = vpop.f32.mrb[16].mxu1  ;;  %1745 = vmatprep.subr.bf16.mxu0 %v1740_v46  ;;  %v1734_v3 = vpack.c.bf16 %v1443_v61, %v1439_v52 }
 0x20e   :  { %v1180_v51 = vpop.f32.mrb[17].mxu1  ;;  %1746 = vmatpush1.bf16.xpose.msra.mxu0 %v1739_v38  ;;  %v1179_v40 = vadd.f32 %v1178_v48, %v967_v59 }
 0x20f   :  { %v1182_v54 = vpop.f32.mrb[18].mxu1  ;;  %v1181_v62 = vadd.f32 %v1180_v51, %v971_v28  ;;  %1777 = vmatprep.mubr.bf16.mxu0 %v1734_v3 }
 0x210   :  { %v1183_v58 = vadd.f32 %v1182_v54, %v967_v59  ;;  %v1184_v60 = vpop.f32.mrb[19].mxu1  ;;  %v1446_v5 = vpop.f32.mrb[28].mxu0 }
 0x211   :  { %v1185_v1 = vadd.f32 %v1184_v60, %v971_v28  ;;  %v1447_v7 = vadd.f32 %v1446_v5, %v1235_v37  ;;  %v1448_v44 = vpop.f32.mrb[29].mxu0 }
 0x212   :  { %v1741_v2 = vpack.c.bf16 %v1183_v58, %v1179_v40  ;;  %v1449_v11 = vadd.f32 %v1448_v44, %v1239_v39  ;;  %v1450_v12 = vpop.f32.mrb[30].mxu0 }
 0x213   :  { %v1742_v4 = vpack.c.bf16 %v1185_v1, %v1181_v62  ;;  %v1451_v45 = vadd.f32 %v1450_v12, %v1235_v37  ;;  %v1452_v14 = vpop.f32.mrb[31].mxu0  ;;  %v2616_v62 = vmov 65535  }
 0x214   :  { %v1453_v16 = vadd.f32 %v1452_v14, %v1239_v39  ;;  %v1890_v1 = vsel %vm1888_vm0, 4294967295, %v2616_v62 }
 0x215   :  { %v1188_v6 = vpop.f32.mrb[20].mxu1  ;;  %1747 = vmatprep.subr.bf16.mxu0 %v1742_v4  ;;  %v1735_v8 = vpack.c.bf16 %v1451_v45, %v1447_v7  ;;  %v1891_v5 = vsel %vm1889_vm1, %v1890_v1, 0 }
 0x216   :  { %v1190_v9 = vpop.f32.mrb[21].mxu1  ;;  %1748 = vmatpush1.bf16.xpose.msra.mxu0 %v1741_v2  ;;  %v1189_v63 = vadd.f32 %v1188_v6, %v967_v59  ;;  %v1736_v10 = vpack.c.bf16 %v1453_v16, %v1449_v11 }
 0x217   :  { %v1192_v13 = vpop.f32.mrb[22].mxu1  ;;  %v1191_v17 = vadd.f32 %v1190_v9, %v971_v28 }
 0x218   :  { %v1193_v15 = vadd.f32 %v1192_v13, %v967_v59  ;;  %v1194_v0 = vpop.f32.mrb[23].mxu1  ;;  %v1456_v22 = vpop.f32.mrb[32].mxu0 }
 0x219   :  { %v1195_v18 = vadd.f32 %v1194_v0, %v971_v28  ;;  %v1457_v23 = vadd.f32 %v1456_v22, %v1235_v37  ;;  %v1458_v19 = vpop.f32.mrb[33].mxu0  ;;  %v1498_v28 = vld [vmem:[%s3118_s4 + $0x4] sm:$0x3] }
 0x21a   :  { %v1743_v20 = vpack.c.bf16 %v1193_v15, %v1189_v63  ;;  %v1459_v24 = vadd.f32 %v1458_v19, %v1239_v39  ;;  %v1460_v25 = vpop.f32.mrb[34].mxu0  ;;  %v1503_v30 = vrot.slane %v1498_v28, %v3010_v41  ;;  %v1507_v31 = vrot.slane %v1498_v28, %v3018_v43 }
 0x21b   :  { %v1744_v21 = vpack.c.bf16 %v1195_v18, %v1191_v17  ;;  %v1461_v56 = vadd.f32 %v1460_v25, %v1235_v37  ;;  %v1462_v26 = vpop.f32.mrb[35].mxu0 }
 0x21c   :  { %v1463_v27 = vadd.f32 %v1462_v26, %v1239_v39 }
 0x21d   :  { %1749 = vmatprep.subr.bf16.mxu0 %v1744_v21  ;;  %v1737_v29 = vpack.c.bf16 %v1461_v56, %v1457_v23 }
 0x21e   :  { %1750 = vmatpush1.bf16.xpose.msra.mxu0 %v1743_v20  ;;  %v1738_v59 = vpack.c.bf16 %v1463_v27, %v1459_v24 }
 0x225   :  { %1778 = vmatmul.mubr.bf16.vlgmr.msra.gmra.mrb[36].mxu0 %v1733_v42 }
 0x226   :  { %1785 = vmatprep.mubr.bf16.mxu0 %v1736_v10 }
 0x22d   :  { %1786 = vmatmul.mubr.bf16.gmra.mrb[40].mxu0 %v1735_v8 }
 0x22e   :  { %1793 = vmatprep.mubr.bf16.mxu0 %v1738_v59 }
 0x235   :  { %1794 = vmatmul.mubr.bf16.gmra.mrb[44].mxu0 %v1737_v29 }
 0x245   :  { %v1704_v32 = vpop.f32.mrb[24].mxu1 }
 0x246   :  { %v1705_v33 = vadd.f32 %v1704_v32, %v1503_v30  ;;  %v1706_v34 = vpop.f32.mrb[25].mxu1 }
 0x247   :  { %v1707_v35 = vadd.f32 %v1706_v34, %v1507_v31  ;;  %v1708_v36 = vpop.f32.mrb[26].mxu1 }
 0x248   :  { %v1709_v37 = vadd.f32 %v1708_v36, %v1503_v30  ;;  %v1710_v38 = vpop.f32.mrb[27].mxu1 }
 0x249   :  { %v1711_v39 = vadd.f32 %v1710_v38, %v1507_v31 }
 0x24a   :  { %v1873_v46 = vpack.c.bf16 %v1709_v37, %v1705_v33 }
 0x24b   :  { %v1874_v47 = vpack.c.bf16 %v1711_v39, %v1707_v35 }
 0x24d   :  { %1898 = vmatprep.subr.bf16.mxu1 %v1874_v47  ;;  %v1714_v48 = vpop.f32.mrb[28].mxu1 }
 0x24e   :  { %1899 = vmatpush1.bf16.msra.mxu1 %v1873_v46  ;;  %v1715_v49 = vadd.f32 %v1714_v48, %v1503_v30  ;;  %v1716_v50 = vpop.f32.mrb[29].mxu1 }
 0x24f   :  { %v1717_v51 = vadd.f32 %v1716_v50, %v1507_v31  ;;  %v1718_v52 = vpop.f32.mrb[30].mxu1 }
 0x250   :  { %v1719_v53 = vadd.f32 %v1718_v52, %v1503_v30  ;;  %v1720_v54 = vpop.f32.mrb[31].mxu1 }
 0x251   :  { %v1721_v55 = vadd.f32 %v1720_v54, %v1507_v31 }
 0x252   :  { %v1875_v57 = vpack.c.bf16 %v1719_v53, %v1715_v49 }
 0x253   :  { %v1876_v40 = vpack.c.bf16 %v1721_v55, %v1717_v51 }
 0x255   :  { %v1724_v58 = vpop.f32.mrb[32].mxu1  ;;  %1900 = vmatprep.subr.bf16.mxu1 %v1876_v40 }
 0x256   :  { %v1725_v60 = vadd.f32 %v1724_v58, %v1503_v30  ;;  %v1726_v61 = vpop.f32.mrb[33].mxu1  ;;  %1901 = vmatpush1.bf16.msra.mxu1 %v1875_v57 }
 0x257   :  { %v1727_v42 = vadd.f32 %v1726_v61, %v1507_v31  ;;  %v1728_v2 = vpop.f32.mrb[34].mxu1 }
 0x258   :  { %v1729_v3 = vadd.f32 %v1728_v2, %v1503_v30  ;;  %v1730_v4 = vpop.f32.mrb[35].mxu1 }
 0x259   :  { %v1731_v6 = vadd.f32 %v1730_v4, %v1507_v31 }
 0x25a   :  { %v1877_v7 = vpack.c.bf16 %v1729_v3, %v1725_v60  ;;  %v2617_v60 = vmov 0  }
 0x25b   :  { %v1878_v44 = vpack.c.bf16 %v1731_v6, %v1727_v42  ;;  %1930 = vmatprep.mubr.bf16.mxu1 %v2617_v60 }
 0x25c   :  { %v1893_v9 = vand.u32 %v1891_v5, %v1877_v7 }
 0x25d   :  { %v1896_v11 = vand.u32 %v1891_v5, %v1878_v44 }
 0x25f   :  { %1902 = vmatprep.subr.bf16.mxu1 %v1896_v11 }
 0x260   :  { %1903 = vmatpush1.bf16.msra.mxu1 %v1893_v9 }
 0x2f8   :  { %v1779_v12 = vpop.f32.mrb[36].mxu0 }
 0x2f9   :  { %v1781_v13 = vpop.f32.mrb[37].mxu0  ;;  %v1803_v45 = vsel %vm1802_vm2, %v1779_v12, -inf }
 0x2fa   :  { %1804 = vmax.xlane.f32.xlu0 %v1803_v45  ;;  %v1782_v14 = vpop.f32.mrb[38].mxu0 }
 0x2fb   :  { %v1784_v63 = vpop.f32.mrb[39].mxu0  ;;  %v1806_v15 = vsel %vm1802_vm2, %v1782_v14, -inf }
 0x2fe   :  { %1807 = vmax.xlane.f32.xlu0 %v1806_v15 }
 0x300   :  { %v1787_v0 = vpop.f32.mrb[40].mxu0 }
 0x301   :  { %v1789_v16 = vpop.f32.mrb[41].mxu0  ;;  %v1809_v17 = vsel %vm1802_vm2, %v1787_v0, -inf }
 0x302   :  { %1810 = vmax.xlane.f32.xlu1 %v1809_v17  ;;  %v1790_v18 = vpop.f32.mrb[42].mxu0 }
 0x303   :  { %v1792_v8 = vpop.f32.mrb[43].mxu0  ;;  %v1812_v20 = vsel %vm1802_vm2, %v1790_v18, -inf }
 0x306   :  { %1813 = vmax.xlane.f32.xlu1 %v1812_v20 }
 0x308   :  { %v1795_v10 = vpop.f32.mrb[44].mxu0 }
 0x309   :  { %v1797_v21 = vpop.f32.mrb[45].mxu0  ;;  %v1815_v22 = vsel %vm1802_vm2, %v1795_v10, -inf }
 0x30a   :  { %1816 = vmax.xlane.f32.xlu0 %v1815_v22  ;;  %v1798_v23 = vpop.f32.mrb[46].mxu0 }
 0x30b   :  { %v1800_v19 = vpop.f32.mrb[47].mxu0  ;;  %v1819_v24 = vsel %vm1818_vm3, %v1798_v23, -inf }
 0x30c   :  { %1820 = vmax.xlane.f32.xlu1 %v1819_v24 }
 0x387   :  { %v1805_v25 = vpop.xlane.xlu0 %1804 }
 0x388   :  { %v1822_v56 = vsub.f32 %v1779_v12, %v1805_v25 }
 0x38a   :  { %v1828_v26 = vmul.f32 1.442695, %v1822_v56 }
 0x38b   :  { %v1808_v27 = vpop.xlane.xlu0 %1807 }
 0x38c   :  { %2537 = vpow2.f32 %v1828_v26  ;;  %v1823_v29 = vsub.f32 %v1782_v14, %v1808_v27 }
 0x38e   :  { %v1830_v59 = vmul.f32 1.442695, %v1823_v29 }
 0x38f   :  { %v1811_v28 = vpop.xlane.xlu1 %1810 }
 0x390   :  { %2539 = vpow2.f32 %v1830_v59  ;;  %v1824_v30 = vsub.f32 %v1787_v0, %v1811_v28 }
 0x392   :  { %v1832_v31 = vmul.f32 1.442695, %v1824_v30 }
 0x393   :  { %v1814_v32 = vpop.xlane.xlu1 %1813 }
 0x394   :  { %2541 = vpow2.f32 %v1832_v31  ;;  %v1825_v33 = vsub.f32 %v1790_v18, %v1814_v32 }
 0x396   :  { %v2538_v34 = vpop.eup %2537  ;;  %v1834_v35 = vmul.f32 1.442695, %v1825_v33 }
 0x397   :  { %v1817_v36 = vpop.xlane.xlu0 %1816  ;;  %v1840_v37 = vsel %vm1802_vm2, %v2538_v34, 0.0 }
 0x398   :  { %2543 = vpow2.f32 %v1834_v35  ;;  %v1826_v38 = vsub.f32 %v1795_v10, %v1817_v36  ;;  %1841 = vadd.xlane.f32.xlu0 %v1840_v37 }
 0x399   :  { %v1821_v39 = vpop.xlane.xlu1 %1820 }
 0x39a   :  { %v2540_v46 = vpop.eup %2539  ;;  %v1836_v47 = vmul.f32 1.442695, %v1826_v38  ;;  %v1827_v48 = vsub.f32 %v1798_v23, %v1821_v39 }
 0x39b   :  { %v1843_v49 = vsel %vm1802_vm2, %v2540_v46, 0.0 }
 0x39c   :  { %2545 = vpow2.f32 %v1836_v47  ;;  %v1838_v50 = vmul.f32 1.442695, %v1827_v48  ;;  %1844 = vadd.xlane.f32.xlu1 %v1843_v49  ;;  %v1986_v49 = vld [vmem:[%s3119_s5] sm:$0x3]  ;;  %s2618_s5 = smov [#allocation6]  }
 0x39d   :  { %s2023_s9 = sshll.u32 %s2618_s5, 4  ;;  %s2024_s9 = int_to_ptr.vmem [resolvable:$true] %s2023_s9 }
 0x39e   :  { %v2542_v51 = vpop.eup %2541  ;;  %2547 = vpow2.f32 %v1838_v50  ;;  %s2587_s10 = scalar_lea.vmem %s2024_s9, 16  ;;  %s2591_s11 = scalar_lea.vmem %s2024_s9, 32 }
 0x39f   :  { %v1846_v52 = vsel %vm1802_vm2, %v2542_v51, 0.0  ;;  %p2588_p8 = scmp.ne.s32.totalorder %s2024_s9, %s2587_s10  ;;  %p2592_p9 = scmp.lt.s32.totalorder %s2024_s9, %s2024_s9 }
 0x3a0   :  { %1847 = vadd.xlane.f32.xlu0 %v1846_v52  ;;  %p2593_p10 = scmp.lt.s32.totalorder %s2591_s11, %s2587_s10 }
 0x3a2   :  { %v2544_v53 = vpop.eup %2543  ;;  %p2594_p11 = por %p2593_p10, %p2592_p9 }
 0x3a3   :  { %v1849_v54 = vsel %vm1802_vm2, %v2544_v53, 0.0 }
 0x3a4   :  { %1850 = vadd.xlane.f32.xlu1 %v1849_v54  ;;  %p2595_p12 = pnand %p2594_p11, %p2588_p8 }
 0x3a6   :  { %v2546_v55 = vpop.eup %2545 }
 0x3a7   :  { %v1852_v57 = vsel %vm1802_vm2, %v2546_v55, 0.0 }
 0x3a8   :  { %v2548_v40 = vpop.eup %2547  ;;  %1853 = vadd.xlane.f32.xlu0 %v1852_v57 }
 0x3a9   :  { %v1855_v58 = vsel %vm1818_vm3, %v2548_v40, 0.0 }
 0x3aa   :  { %1856 = vadd.xlane.f32.xlu1 %v1855_v58 }
 0x425   :  { %v1842_v61 = vpop.xlane.xlu0 %1841 }
 0x426   :  { %2549 = vrcp.f32 %v1842_v61 }
 0x429   :  { %v1845_v62 = vpop.xlane.xlu1 %1844 }
 0x42a   :  { %2551 = vrcp.f32 %v1845_v62 }
 0x42d   :  { %v1848_v1 = vpop.xlane.xlu0 %1847 }
 0x42e   :  { %2553 = vrcp.f32 %v1848_v1 }
 0x430   :  { %v2550_v2 = vpop.eup %2549 }
 0x431   :  { %v1851_v42 = vpop.xlane.xlu1 %1850  ;;  %v1859_v4 = vmul.f32 %v2550_v2, %v2538_v34 }
 0x432   :  { %2555 = vrcp.f32 %v1851_v42  ;;  %v2007_v42 = vstv %s3120_s6 }
 0x434   :  { %v2552_v3 = vpop.eup %2551 }
 0x435   :  { %v1861_v5 = vmul.f32 %v2552_v3, %v2540_v46  ;;  %v1854_v6 = vpop.xlane.xlu0 %1853 }
 0x436   :  { %2557 = vrcp.f32 %v1854_v6 }
 0x437   :  { %v1870_v7 = vpack.c.bf16 %v1861_v5, %v1859_v4  ;;  %v1857_v44 = vpop.xlane.xlu1 %1856 }
 0x438   :  { %2559 = vrcp.f32 %v1857_v44  ;;  %v2554_v9 = vpop.eup %2553 }
 0x439   :  { %2230 = vmatmul.mubr.msk.bf16.vlgmr.msra.gmra.mrb[36].mxu1 %vm1802_vm2, %v1870_v7  ;;  %v1863_v12 = vmul.f32 %v2554_v9, %v2542_v51 }
 0x43a   :  { %1940 = vmatprep.mubr.bf16.mxu1 %v2617_v60 }
 0x43c   :  { %v2556_v11 = vpop.eup %2555 }
 0x43d   :  { %v1865_v13 = vmul.f32 %v2556_v11, %v2544_v53  ;;  %v1991_v53 = vrot.slane %v1986_v49, %v3010_v41 }
 0x43f   :  { %v1871_v45 = vpack.c.bf16 %v1865_v13, %v1863_v12 }
 0x440   :  { %v2558_v14 = vpop.eup %2557 }
 0x441   :  { %2231 = vmatmul.mubr.msk.bf16.gmra.mrb[40].mxu1 %vm1802_vm2, %v1871_v45  ;;  %v1867_v0 = vmul.f32 %v2558_v14, %v2546_v55  ;;  %v1995_v55 = vrot.slane %v1986_v49, %v3018_v43 }
 0x442   :  { %v2560_v63 = vpop.eup %2559  ;;  %1950 = vmatprep.mubr.bf16.mxu1 %v2617_v60 }
 0x443   :  { %v1869_v15 = vmul.f32 %v2560_v63, %v2548_v40 }
 0x445   :  { %v1872_v16 = vpack.c.bf16 %v1869_v15, %v1867_v0 }
 0x449   :  { %2232 = vmatmul.mubr.msk.bf16.gmra.mrb[44].mxu1 %vm1802_vm2, %v1872_v16 }
 0x50c   :  { %v1932_v17 = vpop.f32.mrb[36].mxu1 }
 0x50d   :  { %v1934_v18 = vpop.f32.mrb[37].mxu1 }
 0x50e   :  { %v1936_v8 = vpop.f32.mrb[38].mxu1 }
 0x50f   :  { %v1938_v20 = vpop.f32.mrb[39].mxu1 }
 0x514   :  { %v1942_v10 = vpop.f32.mrb[40].mxu1 }
 0x515   :  { %v1961_v21 = vmax.f32 %v1932_v17, %v1942_v10  ;;  %v1944_v22 = vpop.f32.mrb[41].mxu1 }
 0x516   :  { %v1974_v23 = vmax.f32 %v1934_v18, %v1944_v22  ;;  %v1946_v19 = vpop.f32.mrb[42].mxu1 }
 0x517   :  { %v1962_v24 = vmax.f32 %v1936_v8, %v1946_v19  ;;  %v1948_v25 = vpop.f32.mrb[43].mxu1 }
 0x518   :  { %v1975_v56 = vmax.f32 %v1938_v20, %v1948_v25 }
 0x51c   :  { %v1952_v26 = vpop.f32.mrb[44].mxu1 }
 0x51d   :  { %v1963_v27 = vmax.f32 %v1961_v21, %v1952_v26  ;;  %v1954_v29 = vpop.f32.mrb[45].mxu1 }
 0x51e   :  { %v1976_v59 = vmax.f32 %v1974_v23, %v1954_v29  ;;  %v1956_v28 = vpop.f32.mrb[46].mxu1 }
 0x51f   :  { %v1965_v30 = vsel %vm1964_vm4, %v1956_v28, -inf  ;;  %v1958_v31 = vpop.f32.mrb[47].mxu1 }
 0x520   :  { %v1966_v32 = vmax.f32 %v1962_v24, %v1965_v30  ;;  %v1977_v33 = vsel %vm1964_vm4, %v1958_v31, -inf }
 0x521   :  { %v1978_v34 = vmax.f32 %v1975_v56, %v1977_v33 }
 0x522   :  { %v1967_v35 = vmax.f32 %v1963_v27, %v1966_v32 }
 0x523   :  { %v1979_v36 = vmax.f32 %v1976_v59, %v1978_v34 }
 0x524   :  { %v1968_v37 = vrot.slane %v1967_v35, 4 }
 0x525   :  { %v1980_v38 = vrot.slane %v1979_v36, 4 }
 0x526   :  { %v1969_v39 = vmax.f32 %v1967_v35, %v1968_v37 }
 0x527   :  { %v1981_v46 = vmax.f32 %v1979_v36, %v1980_v38 }
 0x528   :  { %v1970_v47 = vrot.slane %v1969_v39, 2 }
 0x529   :  { %v1982_v48 = vrot.slane %v1981_v46, 2 }
 0x52a   :  { %v1971_v50 = vmax.f32 %v1969_v39, %v1970_v47 }
 0x52b   :  { %v1983_v51 = vmax.f32 %v1981_v46, %v1982_v48 }
 0x52c   :  { %v1972_v52 = vrot.slane %v1971_v50, 1 }
 0x52d   :  { %v1984_v54 = vrot.slane %v1983_v51, 1 }
 0x52e   :  { %v1973_v57 = vmax.f32 %v1971_v50, %v1972_v52 }
 0x52f   :  { %v1985_v40 = vmax.f32 %v1983_v51, %v1984_v54 }
 0x530   :  { %v1998_v58 = vmul.f32 %v1991_v53, %v1973_v57 }
 0x531   :  { %v1999_v60 = vmul.f32 %v1995_v55, %v1985_v40 }
 0x532   :  { %v2001_v61 = vsel %vm2000_vm5, %v1998_v58, 0.0 }
 0x533   :  { %v2002_v62 = vsel %vm2000_vm5, %v1999_v60, 0.0 }
 0x534   :  { %v2003_v1 = vadd.f32 %v2002_v62, %v2001_v61 }
 0x536   :  { %2004 = vadd.xlane.f32.xlu0 %v2003_v1 }
 0x5c3   :  { %v2005_v2 = vpop.xlane.xlu0 %2004 }
 0x5c4   :  { %v2008_v3 = vadd.f32 %v2007_v42, %v2005_v2 }
 0x5c6   :  { %v2233_v4 = vmul.f32 -1.442695, %v2008_v3 }
 0x5c8   :  { %2561 = vpow2.f32 %v2233_v4 }
 0x5d2   :  { %v2562_v41 = vpop.eup %2561 }
 0x5d3   :  { %v2012_v5 = vadd.f32 1.0, %v2562_v41 }
 0x5d5   :  { %2563 = vrcp.f32 %v2012_v5 }
 0x5df   :  { %v2564_v43 = vpop.eup %2563 }
 0x5e0   :  { %2016 = vst.msk [vmem:[#allocation6] sm:$0x1] %vm2015_vm6, %v2564_v43 }
 0x5e1   :  { %2598 = shalt.err (!%p2595_p12)
}
 0x5e2   :  { %s2599_s13 = scalar_lea.hbm %s3121_s7, 16 }
 0x5e3   :  { %p2600_p13 = scmp.ne.s32.totalorder %s3121_s7, %s2599_s13  ;;  %p2603_p0 = scmp.lt.u32.totalorder %s2599_s13, %s3121_s7 }
 0x5e5   :  { %p2605_p1 = pnand %p2603_p0, %p2600_p13 }
 0x5e7   :  { %2608 = shalt.err (!%p2605_p1)
}
 0x5e8   :  { %2026 = dma.vmem_to_hbm [thread:$0]  %s2024_s9, 16, %s3121_s7, [#allocation5]  }
 0x5e9   :  { %2611 = dma.done.wait [#allocation5], 16  }
 0x5ea   :  { %2612 = vsyncadd [#allocation5], 4294967280 }
 0x5eb   :  { %2030 = vsyncpa [#allocation4], 1 }
 0x5ec   :  { %2031 = vsyncpa [#allocation5], 1 }

</bundles_post_ra>
